<compile_context>
chip_gen: v7x
topology: tpu7x:2x2x1
jax: 0.10.0
libtpu: 0.0.40
codegen_flags: <defaults>
</compile_context>

<pallas_src>
import jax
import jax.numpy as jnp
from jax.experimental import pallas as pl
from jax.experimental.pallas import tpu as pltpu


# -----------------------------------------------------------------------------
# Fused attention kernel: one batch tile per grid step.
# -----------------------------------------------------------------------------
def _attention_kernel(h_ref, mask_ref, w_ref, v_ref, ctx_ref, wts_ref):
    Bt, Lp, Hp = h_ref.shape
    Ap = w_ref.shape[1]

    h = h_ref[...]                                     # [Bt, Lp, Hp]  f32

    # Hoisted projection: one big MXU matmul over the flattened (batch, length) axis.
    hf = h.reshape(Bt * Lp, Hp)                        # layout-preserving (Lp%8, Hp%128)
    u = jnp.tanh(jnp.dot(hf, w_ref[...],
                         preferred_element_type=jnp.float32))   # [Bt*Lp, Ap]
    u3 = u.reshape(Bt, Lp, Ap)                         # [Bt, Lp, Ap]

    # Context-vector score: contraction over A (padded A columns of v are zero).
    scores = jnp.sum(u3 * v_ref[...], axis=-1)         # [Bt, Lp]

    # Length / user mask -> -inf, softmax over L (lane axis, lane-dense output).
    scores = jnp.where(mask_ref[...] != 0, -jnp.inf, scores)
    m = jnp.max(scores, axis=-1, keepdims=True)
    e = jnp.exp(scores - m)
    wts = e / jnp.sum(e, axis=-1, keepdims=True)       # [Bt, Lp]
    wts_ref[...] = wts

    # Context vectors: batched [1, L] x [L, H] matmul per batch row (MXU).
    ctx3 = jnp.einsum('bql,blh->bqh', wts[:, None, :], h,
                      preferred_element_type=jnp.float32)       # [Bt, 1, Hp]
    ctx_ref[...] = jnp.sum(ctx3, axis=1)               # [Bt, Hp]


def _round_up(x, m):
    return ((x + m - 1) // m) * m


def attention_forward(h_src, linear_w, context_weight, mask=None, block_b=8):
    """Pallas implementation of Attention.forward.

    h_src:          [B, L, H] float
    linear_w:       [A, H]    (nn.Linear(hidden, attention, bias=False).weight)
    context_weight: [A, 1]
    mask:           [B, L] bool, True = masked (optional)
    returns (context_vectors [B, H], weights [B, L])
    """
    B, L, H = h_src.shape
    A = linear_w.shape[0]

    Bp = _round_up(B, block_b)
    Lp = _round_up(L, 128)
    Hp = _round_up(H, 128)
    Ap = _round_up(A, 128)

    # Zero-pad to (8, 128)-aligned, lane-dense shapes.
    h_p = jnp.zeros((Bp, Lp, Hp), jnp.float32).at[:B, :L, :H].set(
        h_src.astype(jnp.float32))
    w_p = jnp.zeros((Hp, Ap), jnp.float32).at[:H, :A].set(
        linear_w.T.astype(jnp.float32))
    v_p = jnp.zeros((1, Ap), jnp.float32).at[0, :A].set(
        context_weight[:, 0].astype(jnp.float32))

    # int32 mask: 1 = masked. Padded L positions are masked for real rows; padded
    # batch rows stay unmasked (finite garbage, sliced off) so no NaNs appear.
    m_p = jnp.zeros((Bp, Lp), jnp.int32)
    m_p = m_p.at[:B, L:].set(1)
    if mask is not None:
        m_p = m_p.at[:B, :L].set(mask.astype(jnp.int32))

    grid = (Bp // block_b,)
    ctx_p, wts_p = pl.pallas_call(
        _attention_kernel,
        out_shape=(jax.ShapeDtypeStruct((Bp, Hp), jnp.float32),
                   jax.ShapeDtypeStruct((Bp, Lp), jnp.float32)),
        grid=grid,
        in_specs=[pl.BlockSpec((block_b, Lp, Hp), lambda i: (i, 0, 0)),
                  pl.BlockSpec((block_b, Lp), lambda i: (i, 0)),
                  pl.BlockSpec((Hp, Ap), lambda i: (0, 0)),
                  pl.BlockSpec((1, Ap), lambda i: (0, 0))],
        out_specs=(pl.BlockSpec((block_b, Hp), lambda i: (i, 0)),
                   pl.BlockSpec((block_b, Lp), lambda i: (i, 0))),
        compiler_params=pltpu.CompilerParams(
            dimension_semantics=("parallel",)),
    )(h_p, m_p, w_p, v_p)

    return ctx_p[:B, :H], wts_p[:B, :L]


if __name__ == "__main__":
    key = jax.random.PRNGKey(0)
    B, L, H, A = 4, 10, 32, 16                    # batch, length, hidden, attention

    k1, k2, k3 = jax.random.split(key, 3)
    h_src = jax.random.normal(k1, (B, L, H), jnp.float32)
    linear_w = jax.random.normal(k2, (A, H), jnp.float32) * 0.02       # Linear.weight
    context_weight = jax.random.normal(k3, (A, 1), jnp.float32) * 0.02
    lengths = jnp.array([10, 7, 5, 1], jnp.int32)
    mask = jnp.arange(L)[None, :] >= lengths[:, None]                  # True = masked

    ctx, wts = attention_forward(h_src, linear_w, context_weight, mask)
    jax.block_until_ready((ctx, wts))

    # Pure-JAX reference of the PyTorch forward.
    u_ref = jnp.tanh(h_src.reshape(-1, H) @ linear_w.T)
    s_ref = (u_ref @ context_weight).reshape(B, L)
    s_ref = jnp.where(mask, -jnp.inf, s_ref)
    w_ref = jax.nn.softmax(s_ref, axis=-1)
    ctx_ref = jnp.einsum('bl,blh->bh', w_ref, h_src)

    assert ctx.shape == (B, H) and wts.shape == (B, L)
    assert bool(jnp.all(jnp.isfinite(ctx))) and bool(jnp.all(jnp.isfinite(wts)))
    assert float(jnp.max(jnp.abs(wts - w_ref))) < 1e-2
    assert float(jnp.max(jnp.abs(ctx - ctx_ref))) < 1e-2
    print("KERNEL_OK")
</pallas_src>

<mosaic_0001>
module attributes {stable_mosaic.version = 11 : i64} {
  func.func @_attention_kernel(%arg0: i32, %arg1: memref<8x128x128xf32, #tpu.memory_space<vmem>>, %arg2: memref<8x128xi32, #tpu.memory_space<vmem>>, %arg3: memref<128x128xf32, #tpu.memory_space<vmem>>, %arg4: memref<1x128xf32, #tpu.memory_space<vmem>>, %arg5: memref<8x128xf32, #tpu.memory_space<vmem>>, %arg6: memref<8x128xf32, #tpu.memory_space<vmem>>) attributes {dimension_semantics = [#tpu.dimension_semantics<parallel>], iteration_bounds = array<i64: 1>, scalar_prefetch = 0 : i64, scratch_operands = 0 : i64, tpu.core_type = #tpu.core_type<tc>, window_params = [{transform_indices = @transform_0, window_bounds = array<i64: 8, 128, 128>}, {transform_indices = @transform_1, window_bounds = array<i64: 8, 128>}, {pipeline_mode = #tpu.pipeline_mode<synchronous>, transform_indices = @transform_2, window_bounds = array<i64: 128, 128>}, {pipeline_mode = #tpu.pipeline_mode<synchronous>, transform_indices = @transform_3, window_bounds = array<i64: 1, 128>}, {transform_indices = @transform_4, window_bounds = array<i64: 8, 128>}, {transform_indices = @transform_5, window_bounds = array<i64: 8, 128>}]} {
    %c0 = arith.constant 0 : index
    %c0_0 = arith.constant 0 : index
    %c0_1 = arith.constant 0 : index
    %0 = vector.load %arg1[%c0, %c0_0, %c0_1] : memref<8x128x128xf32, #tpu.memory_space<vmem>>, vector<8x128x128xf32>
    %1 = vector.shape_cast %0 : vector<8x128x128xf32> to vector<1024x128xf32>
    %c0_2 = arith.constant 0 : index
    %c0_3 = arith.constant 0 : index
    %2 = vector.load %arg3[%c0_2, %c0_3] : memref<128x128xf32, #tpu.memory_space<vmem>>, vector<128x128xf32>
    %cst = arith.constant dense<0.000000e+00> : vector<1024x128xf32>
    %3 = tpu.matmul %1, %2, %cst {dimension_numbers = #tpu.dot_dimension_numbers<[1], [0], [0], [1], [0, 0, 1, 1], [], []>} : vector<1024x128xf32>, vector<128x128xf32>, vector<1024x128xf32> -> vector<1024x128xf32>
    %4 = math.tanh %3 : vector<1024x128xf32>
    %5 = vector.shape_cast %4 : vector<1024x128xf32> to vector<8x128x128xf32>
    %c0_4 = arith.constant 0 : index
    %c0_5 = arith.constant 0 : index
    %6 = vector.load %arg4[%c0_4, %c0_5] : memref<1x128xf32, #tpu.memory_space<vmem>>, vector<1x128xf32>
    %7 = vector.shape_cast %6 : vector<1x128xf32> to vector<1x1x128xf32>
    %8 = vector.broadcast %7 : vector<1x1x128xf32> to vector<8x128x128xf32>
    %9 = arith.mulf %5, %8 : vector<8x128x128xf32>
    %cst_6 = arith.constant dense<0.000000e+00> : vector<8x128xf32>
    %10 = vector.multi_reduction <add>, %9, %cst_6 [2] : vector<8x128x128xf32> to vector<8x128xf32>
    %c0_7 = arith.constant 0 : index
    %c0_8 = arith.constant 0 : index
    %11 = vector.load %arg2[%c0_7, %c0_8] : memref<8x128xi32, #tpu.memory_space<vmem>>, vector<8x128xi32>
    %c0_i32 = arith.constant 0 : i32
    %12 = vector.broadcast %c0_i32 : i32 to vector<8x128xi32>
    %13 = arith.cmpi ne, %11, %12 : vector<8x128xi32>
    %cst_9 = arith.constant 0xFF800000 : f32
    %14 = vector.broadcast %cst_9 : f32 to vector<8x128xf32>
    %15 = arith.select %13, %14, %10 : vector<8x128xi1>, vector<8x128xf32>
    %cst_10 = arith.constant dense<0xFF800000> : vector<8xf32>
    %16 = vector.multi_reduction <maximumf>, %15, %cst_10 [1] : vector<8x128xf32> to vector<8xf32>
    %17 = vector.shape_cast %16 : vector<8xf32> to vector<8x1xf32>
    %18 = vector.broadcast %17 : vector<8x1xf32> to vector<8x128xf32>
    %19 = arith.subf %15, %18 : vector<8x128xf32>
    %20 = math.exp %19 : vector<8x128xf32>
    %cst_11 = arith.constant dense<0.000000e+00> : vector<8xf32>
    %21 = vector.multi_reduction <add>, %20, %cst_11 [1] : vector<8x128xf32> to vector<8xf32>
    %22 = vector.shape_cast %21 : vector<8xf32> to vector<8x1xf32>
    %23 = vector.broadcast %22 : vector<8x1xf32> to vector<8x128xf32>
    %24 = arith.divf %20, %23 : vector<8x128xf32>
    %c0_12 = arith.constant 0 : index
    %c0_13 = arith.constant 0 : index
    %25 = vector.load %arg6[%c0_12, %c0_13] : memref<8x128xf32, #tpu.memory_space<vmem>>, vector<8x128xf32>
    tpu.vector_store %arg6[%c0_12, %c0_13], %24 {strides = array<i32>} : memref<8x128xf32, #tpu.memory_space<vmem>>, vector<8x128xf32>,
    %26 = vector.shape_cast %24 : vector<8x128xf32> to vector<8x1x128xf32>
    "tpu.trace_start"() <{level = 10 : i32, message = "bql,blh->bqh"}> : () -> ()
    %cst_14 = arith.constant dense<0.000000e+00> : vector<8x1x128xf32>
    %27 = tpu.matmul %26, %0, %cst_14 {dimension_numbers = #tpu.dot_dimension_numbers<[2], [1], [1], [2], [0, 0, 0, 1, 1, 2], [0], [0]>} : vector<8x1x128xf32>, vector<8x128x128xf32>, vector<8x1x128xf32> -> vector<8x1x128xf32>
    "tpu.trace_stop"() : () -> ()
    %cst_15 = arith.constant dense<0.000000e+00> : vector<8x128xf32>
    %28 = vector.multi_reduction <add>, %27, %cst_15 [1] : vector<8x1x128xf32> to vector<8x128xf32>
    %c0_16 = arith.constant 0 : index
    %c0_17 = arith.constant 0 : index
    %29 = vector.load %arg5[%c0_16, %c0_17] : memref<8x128xf32, #tpu.memory_space<vmem>>, vector<8x128xf32>
    tpu.vector_store %arg5[%c0_16, %c0_17], %28 {strides = array<i32>} : memref<8x128xf32, #tpu.memory_space<vmem>>, vector<8x128xf32>,
    return
  }
  func.func @transform_0(%arg0: i32) -> (i32, i32, i32) {
    %c0_i32 = arith.constant 0 : i32
    %c0_i32_0 = arith.constant 0 : i32
    %c0_i32_1 = arith.constant 0 : i32
    return %arg0, %c0_i32, %c0_i32_0 : i32, i32, i32
  }
  func.func @transform_1(%arg0: i32) -> (i32, i32) {
    %c0_i32 = arith.constant 0 : i32
    %c0_i32_0 = arith.constant 0 : i32
    return %arg0, %c0_i32 : i32, i32
  }
  func.func @transform_2(%arg0: i32) -> (i32, i32) {
    %c0_i32 = arith.constant 0 : i32
    %c0_i32_0 = arith.constant 0 : i32
    %c0_i32_1 = arith.constant 0 : i32
    return %c0_i32, %c0_i32_0 : i32, i32
  }
  func.func @transform_3(%arg0: i32) -> (i32, i32) {
    %c0_i32 = arith.constant 0 : i32
    %c0_i32_0 = arith.constant 0 : i32
    %c0_i32_1 = arith.constant 0 : i32
    return %c0_i32, %c0_i32_0 : i32, i32
  }
  func.func @transform_4(%arg0: i32) -> (i32, i32) {
    %c0_i32 = arith.constant 0 : i32
    %c0_i32_0 = arith.constant 0 : i32
    return %arg0, %c0_i32 : i32, i32
  }
  func.func @transform_5(%arg0: i32) -> (i32, i32) {
    %c0_i32 = arith.constant 0 : i32
    %c0_i32_0 = arith.constant 0 : i32
    return %arg0, %c0_i32 : i32, i32
  }
}

</mosaic_0001>

<bundles_post_ra>
// kernel: tpu_custom_call.1
= control target key start
LH: loop header
LB: loop body
LE: loop exit
PB: predicated region body
PF: predicated region fallthrough
CT: control target
= control target key end

     0   :  { %11 = vsyncpa [#allocation3], 0  ;;  %s5303_s0 = inlined_call_operand.hbm [shape: f32[8,128,128], index: 0, kind: input, shape index: {}]   ;;  %s5304_s1 = inlined_call_operand.hbm [shape: s32[8,128], index: 1, kind: input, shape index: {}]   ;;  %s5305_s2 = inlined_call_operand.hbm [shape: f32[128,128], index: 2, kind: input, shape index: {}]   ;;  %s5306_s3 = inlined_call_operand.vmem [shape: f32[1,128], index: 3, kind: input, shape index: {}]   ;;  %s5307_s4 = inlined_call_operand.hbm [shape: f32[8,128], index: 4, kind: output, shape index: {0}]   ;;  %s5308_s5 = inlined_call_operand.hbm [shape: f32[8,128], index: 5, kind: output, shape index: {1}]  }
   0x1   :  { %12 = vsyncpa [#allocation6], 0 }
   0x2   :  { %13 = vsyncpa [#allocation4], 0 }
   0x3   :  { %14 = vsyncpa [#allocation10], 0  ;;  %s4435_s18 = smov [#allocation5]   ;;  %s4436_s20 = smov [#allocation2]  }
   0x4   :  { %s33_s19 = sshll.u32 %s4435_s18, 4  ;;  %s20_s21 = sshll.u32 %s4436_s20, 4  ;;  %s34_s19 = int_to_ptr.vmem [resolvable:$true] %s33_s19  ;;  %s4476_s21 = int_to_ptr.vmem [resolvable:$true] %s20_s21 }
   0x5   :  { %s4317_s24 = scalar_lea.hbm %s5304_s1, 128 }
   0x6   :  { %p4318_p0 = scmp.ne.s32.totalorder %s5304_s1, %s4317_s24  ;;  %p4321_p1 = scmp.lt.u32.totalorder %s4317_s24, %s5304_s1 }
   0x8   :  { %p4323_p2 = pnand %p4321_p1, %p4318_p0 }
   0xa   :  { %4326 = shalt.err (!%p4323_p2)
}
   0xb   :  { %s4327_s29 = scalar_lea.vmem %s34_s19, 128  ;;  %p4332_p4 = scmp.lt.s32.totalorder %s34_s19, %s34_s19 }
   0xc   :  { %p4328_p3 = scmp.ne.s32.totalorder %s34_s19, %s4327_s29  ;;  %p4333_p5 = scmp.lt.s32.totalorder %s4327_s29, %s4327_s29 }
   0xe   :  { %p4334_p6 = por %p4333_p5, %p4332_p4 }
  0x10   :  { %p4335_p7 = pnand %p4334_p6, %p4328_p3 }
  0x12   :  { %4338 = shalt.err (!%p4335_p7)
}
  0x13   :  { %36 = dma.hbm_to_vmem [thread:$0]  %s5304_s1, 128, %s34_s19, [#allocation6]  }
  0x14   :  { %s4339_s9 = scalar_lea.hbm %s5303_s0, 16384 }
  0x15   :  { %p4340_p8 = scmp.ne.s32.totalorder %s5303_s0, %s4339_s9  ;;  %p4343_p9 = scmp.lt.u32.totalorder %s4339_s9, %s5303_s0 }
  0x17   :  { %p4345_p10 = pnand %p4343_p9, %p4340_p8 }
  0x19   :  { %4348 = shalt.err (!%p4345_p10)
}
  0x1a   :  { %s4349_s14 = scalar_lea.vmem %s4476_s21, 16384  ;;  %p4354_p12 = scmp.lt.s32.totalorder %s4476_s21, %s4476_s21 }
  0x1b   :  { %p4350_p11 = scmp.ne.s32.totalorder %s4476_s21, %s4349_s14  ;;  %p4355_p13 = scmp.lt.s32.totalorder %s4349_s14, %s4349_s14 }
  0x1d   :  { %p4356_p0 = por %p4355_p13, %p4354_p12 }
  0x1f   :  { %p4357_p1 = pnand %p4356_p0, %p4350_p11 }
  0x21   :  { %4360 = shalt.err (!%p4357_p1)
}
  0x22   :  { %s4437_s1 = smov 128   ;;  %s4438_s15 = smov 8  }
  0x23   :  { %26 = dma.hbm_to_vmem [thread:$0]  %s5303_s0, 16384, %s4476_s21, [#allocation3], %s4437_s1, %s4437_s1, %s4438_s15  }
  0x24   :  { %s4439_s18 = smov [#allocation7]   ;;  %s4361_s23 = scalar_lea.hbm %s5305_s2, 2048 }
  0x25   :  { %s42_s19 = sshll.u32 %s4439_s18, 4  ;;  %p4362_p2 = scmp.ne.s32.totalorder %s5305_s2, %s4361_s23  ;;  %s43_s19 = int_to_ptr.vmem [resolvable:$true] %s42_s19 }
  0x26   :  { %p4365_p3 = scmp.lt.u32.totalorder %s4361_s23, %s5305_s2 }
  0x28   :  { %p4367_p4 = pnand %p4365_p3, %p4362_p2 }
  0x2a   :  { %4370 = shalt.err (!%p4367_p4)
}
  0x2b   :  { %s4371_s28 = scalar_lea.vmem %s43_s19, 2048  ;;  %p4376_p6 = scmp.lt.s32.totalorder %s43_s19, %s43_s19 }
  0x2c   :  { %p4372_p5 = scmp.ne.s32.totalorder %s43_s19, %s4371_s28  ;;  %p4377_p7 = scmp.lt.s32.totalorder %s4371_s28, %s4371_s28 }
  0x2e   :  { %p4378_p8 = por %p4377_p7, %p4376_p6 }
  0x30   :  { %p4379_p9 = pnand %p4378_p8, %p4372_p5 }
  0x32   :  { %4382 = shalt.err (!%p4379_p9)
}
  0x33   :  { %48 = dma.hbm_to_vmem [thread:$0]  %s5305_s2, 2048, %s43_s19, [#allocation6], %s4437_s1, %s4437_s1, %s4438_s15  }
  0x34   :  { %4427 = dma.done.wait [#allocation3], 16384  }
  0x35   :  { %4428 = vsyncadd [#allocation3], 4294950912 }
  0x36   :  { %4429 = dma.done.wait [#allocation6], 2176  }
  0x37   :  { %4430 = vsyncadd [#allocation6], 4294965120  ;;  %v188_v0 = vld [vmem:[#allocation7] sm:$0xff]  ;;  %v189_v1 = vld [vmem:[#allocation7 + $0x8] sm:$0xff]  ;;  %vm1569_vm0 = vcmask 130112   ;;  %vm1576_vm1 = vcmask 195712  }
  0x38   :  { %v190_v2 = vld [vmem:[#allocation7 + $0x10] sm:$0xff]  ;;  %v3713_v3 = vpack.c.bf16 %v189_v1, %v188_v0  ;;  %v191_v4 = vld [vmem:[#allocation7 + $0x18] sm:$0xff]  ;;  %v192_v6 = vld [vmem:[#allocation7 + $0x20] sm:$0xff]  ;;  %vm1583_vm2 = vcmask 261312   ;;  %vm1590_vm3 = vcmask 326912   ;;  %vm1597_vm4 = vcmask 392512  }
  0x39   :  { %v3717_v5 = vpack.c.bf16 %v191_v4, %v190_v2  ;;  %v193_v7 = vld [vmem:[#allocation7 + $0x28] sm:$0xff]  ;;  %v194_v9 = vld [vmem:[#allocation7 + $0x30] sm:$0xff]  ;;  %v195_v10 = vld [vmem:[#allocation7 + $0x38] sm:$0xff]  ;;  %vm1604_vm5 = vcmask 458112   ;;  %vm1611_vm6 = vcmask 523712   ;;  %vm1618_vm7 = vcmask 589312  }
  0x3a   :  { %3714 = vmatprep.subr.bf16.mxu0 %v3713_v3  ;;  %v3721_v8 = vpack.c.bf16 %v193_v7, %v192_v6  ;;  %v60_v11 = vld [vmem:[#allocation2] sm:$0xff]  ;;  %v4519_v12 = vld [vmem:[#allocation2 + $0x10] sm:$0xff]  ;;  %v4521_v13 = vld [vmem:[#allocation2 + $0x18] sm:$0xff]  ;;  %v3725_v26 = vpack.c.bf16 %v195_v10, %v194_v9  ;;  %vm1625_vm8 = vcmask 654912   ;;  %vm1632_vm9 = vcmask 720512  }
  0x3b   :  { %3716 = vmatpush3.bf16.msra.mxu0 %v3713_v3  ;;  %3241 = vmatprep.mubr.f32.mxu0 %v60_v11  ;;  %v4523_v14 = vld [vmem:[#allocation2 + $0x20] sm:$0xff]  ;;  %v4527_v16 = vld [vmem:[#allocation2 + $0x28] sm:$0xff]  ;;  %v4529_v17 = vld [vmem:[#allocation2 + $0x30] sm:$0xff]  ;;  %vm1639_vm10 = vcmask 786112   ;;  %vm1646_vm11 = vcmask 851712   ;;  %vm1653_vm12 = vcmask 917312  }
  0x3c   :  { %3718 = vmatprep.subr.bf16.mxu0 %v3717_v5  ;;  %v4531_v18 = vld [vmem:[#allocation2 + $0x38] sm:$0xff]  ;;  %v196_v19 = vld [vmem:[#allocation7 + $0x40] sm:$0xff]  ;;  %v197_v20 = vld [vmem:[#allocation7 + $0x48] sm:$0xff]  ;;  %vm1660_vm13 = vcmask 982912   ;;  %vm1667_vm14 = vcmask 1048512   ;;  %vm5312_vm15 = vcmask 1041409  }
  0x3d   :  { %v4537_v23 = vld [vmem:[#allocation2 + $0x40] sm:$0xff]  ;;  %v4539_v24 = vld [vmem:[#allocation2 + $0x48] sm:$0xff]  ;;  %v4541_v25 = vld [vmem:[#allocation2 + $0x50] sm:$0xff]  ;;  %v3729_v44 = vpack.c.bf16 %v197_v20, %v196_v19 }
  0x3e   :  { %v4545_v28 = vld [vmem:[#allocation2 + $0x58] sm:$0xff]  ;;  %v4547_v29 = vld [vmem:[#allocation2 + $0x60] sm:$0xff]  ;;  %v4549_v30 = vld [vmem:[#allocation2 + $0x68] sm:$0xff] }
  0x3f   :  { %3720 = vmatpush3.bf16.msra.mxu0 %v3717_v5  ;;  %v4555_v33 = vld [vmem:[#allocation2 + $0x70] sm:$0xff]  ;;  %v4557_v34 = vld [vmem:[#allocation2 + $0x78] sm:$0xff]  ;;  %v4559_v35 = vld [vmem:[#allocation2 + $0x80] sm:$0xff] }
  0x40   :  { %3722 = vmatprep.subr.bf16.mxu0 %v3721_v8  ;;  %v4563_v37 = vld [vmem:[#allocation2 + $0x88] sm:$0xff]  ;;  %v4565_v38 = vld [vmem:[#allocation2 + $0x90] sm:$0xff]  ;;  %v4567_v39 = vld [vmem:[#allocation2 + $0x98] sm:$0xff] }
  0x41   :  { %5317 = vst [vmem:[#allocation15_spill] sm:$0xff] %v4565_v38  ;;  %5318 = vst [vmem:[#allocation16_spill] sm:$0xff] %v4567_v39  ;;  %v4573_v42 = vld [vmem:[#allocation2 + $0xa0] sm:$0xff]  ;;  %v4575_v43 = vld [vmem:[#allocation2 + $0xa8] sm:$0xff] }
  0x42   :  { %5319 = vst [vmem:[#allocation17_spill] sm:$0xff] %v4573_v42  ;;  %5320 = vst [vmem:[#allocation18_spill] sm:$0xff] %v4575_v43  ;;  %v198_v46 = vld [vmem:[#allocation7 + $0x50] sm:$0xff]  ;;  %v199_v47 = vld [vmem:[#allocation7 + $0x58] sm:$0xff] }
  0x43   :  { %3724 = vmatpush3.bf16.msra.mxu0 %v3721_v8  ;;  %v3733_v48 = vpack.c.bf16 %v199_v47, %v198_v46  ;;  %v200_v49 = vld [vmem:[#allocation7 + $0x60] sm:$0xff]  ;;  %v201_v50 = vld [vmem:[#allocation7 + $0x68] sm:$0xff]  ;;  %v202_v52 = vld [vmem:[#allocation7 + $0x70] sm:$0xff] }
  0x44   :  { %3726 = vmatprep.subr.bf16.mxu0 %v3725_v26  ;;  %v3737_v51 = vpack.c.bf16 %v201_v50, %v200_v49  ;;  %v203_v53 = vld [vmem:[#allocation7 + $0x78] sm:$0xff]  ;;  %v61_v55 = vld [vmem:[#allocation2 + $0x8] sm:$0xff]  ;;  %v82_v56 = vld [vmem:[#allocation2 + $0xb0] sm:$0xff] }
  0x45   :  { %v3741_v54 = vpack.c.bf16 %v203_v53, %v202_v52  ;;  %v83_v57 = vld [vmem:[#allocation2 + $0xb8] sm:$0xff]  ;;  %v84_v58 = vld [vmem:[#allocation2 + $0xc0] sm:$0xff]  ;;  %v85_v59 = vld [vmem:[#allocation2 + $0xc8] sm:$0xff] }
  0x46   :  { %v86_v60 = vld [vmem:[#allocation2 + $0xd0] sm:$0xff]  ;;  %v87_v61 = vld [vmem:[#allocation2 + $0xd8] sm:$0xff]  ;;  %v88_v62 = vld [vmem:[#allocation2 + $0xe0] sm:$0xff] }
  0x47   :  { %3728 = vmatpush3.bf16.msra.mxu0 %v3725_v26  ;;  %v89_v63 = vld [vmem:[#allocation2 + $0xe8] sm:$0xff]  ;;  %v90_v0 = vld [vmem:[#allocation2 + $0xf0] sm:$0xff]  ;;  %v91_v1 = vld [vmem:[#allocation2 + $0xf8] sm:$0xff] }
  0x48   :  { %3730 = vmatprep.subr.bf16.mxu0 %v3729_v44  ;;  %v92_v2 = vld [vmem:[#allocation2 + $0x100] sm:$0xff]  ;;  %v93_v3 = vld [vmem:[#allocation2 + $0x108] sm:$0xff]  ;;  %v94_v4 = vld [vmem:[#allocation2 + $0x110] sm:$0xff] }
  0x49   :  { %v95_v5 = vld [vmem:[#allocation2 + $0x118] sm:$0xff]  ;;  %v96_v6 = vld [vmem:[#allocation2 + $0x120] sm:$0xff]  ;;  %v97_v7 = vld [vmem:[#allocation2 + $0x128] sm:$0xff] }
  0x4a   :  { %v98_v8 = vld [vmem:[#allocation2 + $0x130] sm:$0xff]  ;;  %v99_v9 = vld [vmem:[#allocation2 + $0x138] sm:$0xff]  ;;  %v100_v10 = vld [vmem:[#allocation2 + $0x140] sm:$0xff] }
  0x4b   :  { %3732 = vmatpush3.bf16.msra.mxu0 %v3729_v44  ;;  %v101_v11 = vld [vmem:[#allocation2 + $0x148] sm:$0xff]  ;;  %v102_v19 = vld [vmem:[#allocation2 + $0x150] sm:$0xff]  ;;  %v103_v20 = vld [vmem:[#allocation2 + $0x158] sm:$0xff] }
  0x4c   :  { %3734 = vmatprep.subr.bf16.mxu0 %v3733_v48  ;;  %v104_v26 = vld [vmem:[#allocation2 + $0x160] sm:$0xff]  ;;  %v105_v44 = vld [vmem:[#allocation2 + $0x168] sm:$0xff]  ;;  %v106_v46 = vld [vmem:[#allocation2 + $0x170] sm:$0xff] }
  0x4d   :  { %v107_v47 = vld [vmem:[#allocation2 + $0x178] sm:$0xff]  ;;  %v109_v49 = vld [vmem:[#allocation2 + $0x188] sm:$0xff]  ;;  %v110_v50 = vld [vmem:[#allocation2 + $0x190] sm:$0xff] }
  0x4e   :  { %v112_v52 = vld [vmem:[#allocation2 + $0x1a0] sm:$0xff]  ;;  %v113_v53 = vld [vmem:[#allocation2 + $0x1a8] sm:$0xff] }
  0x4f   :  { %3736 = vmatpush3.bf16.msra.mxu0 %v3733_v48  ;;  %v108_v48 = vld [vmem:[#allocation2 + $0x180] sm:$0xff] }
  0x50   :  { %3738 = vmatprep.subr.bf16.mxu0 %v3737_v51 }
  0x53   :  { %3740 = vmatpush3.bf16.msra.mxu0 %v3737_v51  ;;  %v111_v51 = vld [vmem:[#allocation2 + $0x198] sm:$0xff] }
  0x54   :  { %3742 = vmatprep.subr.bf16.mxu0 %v3741_v54 }
  0x57   :  { %3744 = vmatpush3.bf16.msra.mxu0 %v3741_v54  ;;  %v114_v54 = vld [vmem:[#allocation2 + $0x1b0] sm:$0xff] }
  0x5a   :  { %3242 = vmatmul.mubr.f32.vlgmr.msra.gmra.mrb[0].mxu0 %v61_v55  ;;  %v115_v55 = vld [vmem:[#allocation2 + $0x1b8] sm:$0xff] }
  0x5b   :  { %3244 = vmatprep.mubr.f32.mxu0 %v4519_v12 }
  0x5e   :  { %3245 = vmatmul.mubr.f32.gmra.mrb[2].mxu0 %v4521_v13 }
  0x5f   :  { %3247 = vmatprep.mubr.f32.mxu0 %v4523_v14 }
  0x62   :  { %3248 = vmatmul.mubr.f32.gmra.mrb[4].mxu0 %v4527_v16 }
  0x63   :  { %3250 = vmatprep.mubr.f32.mxu0 %v4529_v17 }
  0x66   :  { %3251 = vmatmul.mubr.f32.gmra.mrb[6].mxu0 %v4531_v18 }
  0x67   :  { %3253 = vmatprep.mubr.f32.mxu0 %v4537_v23 }
  0x6a   :  { %3254 = vmatmul.mubr.f32.gmra.mrb[8].mxu0 %v4539_v24 }
  0x6b   :  { %3256 = vmatprep.mubr.f32.mxu0 %v4541_v25 }
  0x6e   :  { %3257 = vmatmul.mubr.f32.gmra.mrb[10].mxu0 %v4545_v28 }
  0x6f   :  { %3259 = vmatprep.mubr.f32.mxu0 %v4547_v29 }
  0x72   :  { %3260 = vmatmul.mubr.f32.gmra.mrb[12].mxu0 %v4549_v30 }
  0x73   :  { %3262 = vmatprep.mubr.f32.mxu0 %v4555_v33 }
  0x76   :  { %3263 = vmatmul.mubr.f32.gmra.mrb[14].mxu0 %v4557_v34 }
  0x77   :  { %3265 = vmatprep.mubr.f32.mxu0 %v4559_v35 }
  0x7a   :  { %3266 = vmatmul.mubr.f32.gmra.mrb[16].mxu0 %v4563_v37 }
  0x7b   :  { %3268 = vmatprep.mubr.f32.mxu0 %v4565_v38 }
  0x7e   :  { %3269 = vmatmul.mubr.f32.gmra.mrb[18].mxu0 %v4567_v39 }
  0x7f   :  { %3271 = vmatprep.mubr.f32.mxu0 %v4573_v42 }
  0x82   :  { %3272 = vmatmul.mubr.f32.gmra.mrb[20].mxu0 %v4575_v43 }
  0x83   :  { %3274 = vmatprep.mubr.f32.mxu0 %v82_v56  ;;  %v116_v56 = vld [vmem:[#allocation2 + $0x1c0] sm:$0xff] }
  0x86   :  { %3275 = vmatmul.mubr.f32.gmra.mrb[22].mxu0 %v83_v57  ;;  %v117_v57 = vld [vmem:[#allocation2 + $0x1c8] sm:$0xff] }
  0x87   :  { %3277 = vmatprep.mubr.f32.mxu0 %v84_v58  ;;  %v118_v58 = vld [vmem:[#allocation2 + $0x1d0] sm:$0xff] }
  0x8a   :  { %3278 = vmatmul.mubr.f32.gmra.mrb[24].mxu0 %v85_v59  ;;  %v119_v59 = vld [vmem:[#allocation2 + $0x1d8] sm:$0xff] }
  0x8b   :  { %3280 = vmatprep.mubr.f32.mxu0 %v86_v60  ;;  %v120_v60 = vld [vmem:[#allocation2 + $0x1e0] sm:$0xff] }
  0x8e   :  { %3281 = vmatmul.mubr.f32.gmra.mrb[26].mxu0 %v87_v61  ;;  %v121_v61 = vld [vmem:[#allocation2 + $0x1e8] sm:$0xff] }
  0x8f   :  { %3283 = vmatprep.mubr.f32.mxu0 %v88_v62  ;;  %v122_v62 = vld [vmem:[#allocation2 + $0x1f0] sm:$0xff] }
  0x92   :  { %3284 = vmatmul.mubr.f32.gmra.mrb[28].mxu0 %v89_v63  ;;  %v123_v63 = vld [vmem:[#allocation2 + $0x1f8] sm:$0xff] }
  0x93   :  { %3286 = vmatprep.mubr.f32.mxu0 %v90_v0  ;;  %v124_v0 = vld [vmem:[#allocation2 + $0x200] sm:$0xff] }
  0x96   :  { %3287 = vmatmul.mubr.f32.gmra.mrb[30].mxu0 %v91_v1  ;;  %v125_v1 = vld [vmem:[#allocation2 + $0x208] sm:$0xff] }
  0x97   :  { %3289 = vmatprep.mubr.f32.mxu0 %v92_v2  ;;  %v126_v2 = vld [vmem:[#allocation2 + $0x210] sm:$0xff] }
  0x9a   :  { %3290 = vmatmul.mubr.f32.gmra.mrb[32].mxu0 %v93_v3  ;;  %v127_v3 = vld [vmem:[#allocation2 + $0x218] sm:$0xff] }
  0x9b   :  { %3292 = vmatprep.mubr.f32.mxu0 %v94_v4  ;;  %v128_v4 = vld [vmem:[#allocation2 + $0x220] sm:$0xff] }
  0x9e   :  { %3293 = vmatmul.mubr.f32.gmra.mrb[34].mxu0 %v95_v5  ;;  %v129_v5 = vld [vmem:[#allocation2 + $0x228] sm:$0xff] }
  0x9f   :  { %3295 = vmatprep.mubr.f32.mxu0 %v96_v6  ;;  %v130_v6 = vld [vmem:[#allocation2 + $0x230] sm:$0xff] }
  0xa2   :  { %3296 = vmatmul.mubr.f32.gmra.mrb[36].mxu0 %v97_v7  ;;  %v131_v7 = vld [vmem:[#allocation2 + $0x238] sm:$0xff] }
  0xa3   :  { %3298 = vmatprep.mubr.f32.mxu0 %v98_v8  ;;  %v132_v8 = vld [vmem:[#allocation2 + $0x240] sm:$0xff] }
  0xa6   :  { %3299 = vmatmul.mubr.f32.gmra.mrb[38].mxu0 %v99_v9  ;;  %v133_v9 = vld [vmem:[#allocation2 + $0x248] sm:$0xff] }
  0xa7   :  { %3301 = vmatprep.mubr.f32.mxu0 %v100_v10  ;;  %v134_v10 = vld [vmem:[#allocation2 + $0x250] sm:$0xff] }
  0xaa   :  { %3302 = vmatmul.mubr.f32.gmra.mrb[40].mxu0 %v101_v11  ;;  %v135_v11 = vld [vmem:[#allocation2 + $0x258] sm:$0xff] }
  0xab   :  { %3304 = vmatprep.mubr.f32.mxu0 %v102_v19  ;;  %v136_v19 = vld [vmem:[#allocation2 + $0x260] sm:$0xff] }
  0xae   :  { %3305 = vmatmul.mubr.f32.gmra.mrb[42].mxu0 %v103_v20  ;;  %v137_v20 = vld [vmem:[#allocation2 + $0x268] sm:$0xff] }
  0xaf   :  { %3307 = vmatprep.mubr.f32.mxu0 %v104_v26  ;;  %v138_v26 = vld [vmem:[#allocation2 + $0x270] sm:$0xff] }
  0xb2   :  { %3308 = vmatmul.mubr.f32.gmra.mrb[44].mxu0 %v105_v44  ;;  %v139_v44 = vld [vmem:[#allocation2 + $0x278] sm:$0xff] }
  0xb3   :  { %3310 = vmatprep.mubr.f32.mxu0 %v106_v46  ;;  %v140_v46 = vld [vmem:[#allocation2 + $0x280] sm:$0xff] }
  0xb6   :  { %3311 = vmatmul.mubr.f32.gmra.mrb[46].mxu0 %v107_v47  ;;  %v141_v47 = vld [vmem:[#allocation2 + $0x288] sm:$0xff] }
  0xb7   :  { %3313 = vmatprep.mubr.f32.mxu0 %v108_v48  ;;  %v142_v48 = vld [vmem:[#allocation2 + $0x290] sm:$0xff] }
  0xba   :  { %3314 = vmatmul.mubr.f32.gmra.mrb[48].mxu0 %v109_v49  ;;  %v143_v49 = vld [vmem:[#allocation2 + $0x298] sm:$0xff] }
  0xbb   :  { %3316 = vmatprep.mubr.f32.mxu0 %v110_v50  ;;  %v144_v50 = vld [vmem:[#allocation2 + $0x2a0] sm:$0xff] }
  0xbe   :  { %3317 = vmatmul.mubr.f32.gmra.mrb[50].mxu0 %v111_v51  ;;  %v145_v51 = vld [vmem:[#allocation2 + $0x2a8] sm:$0xff] }
  0xbf   :  { %3319 = vmatprep.mubr.f32.mxu0 %v112_v52  ;;  %v146_v52 = vld [vmem:[#allocation2 + $0x2b0] sm:$0xff] }
  0xc2   :  { %3320 = vmatmul.mubr.f32.gmra.mrb[52].mxu0 %v113_v53  ;;  %v147_v53 = vld [vmem:[#allocation2 + $0x2b8] sm:$0xff] }
  0xc3   :  { %3322 = vmatprep.mubr.f32.mxu0 %v114_v54  ;;  %v148_v54 = vld [vmem:[#allocation2 + $0x2c0] sm:$0xff] }
  0xc6   :  { %3323 = vmatmul.mubr.f32.gmra.mrb[54].mxu0 %v115_v55  ;;  %v149_v55 = vld [vmem:[#allocation2 + $0x2c8] sm:$0xff] }
  0xc7   :  { %3325 = vmatprep.mubr.f32.mxu0 %v116_v56  ;;  %v150_v56 = vld [vmem:[#allocation2 + $0x2d0] sm:$0xff] }
  0xca   :  { %3326 = vmatmul.mubr.f32.gmra.mrb[56].mxu0 %v117_v57  ;;  %v151_v57 = vld [vmem:[#allocation2 + $0x2d8] sm:$0xff] }
  0xcb   :  { %3328 = vmatprep.mubr.f32.mxu0 %v118_v58  ;;  %v152_v58 = vld [vmem:[#allocation2 + $0x2e0] sm:$0xff] }
  0xce   :  { %3329 = vmatmul.mubr.f32.gmra.mrb[58].mxu0 %v119_v59  ;;  %v153_v59 = vld [vmem:[#allocation2 + $0x2e8] sm:$0xff] }
  0xcf   :  { %3331 = vmatprep.mubr.f32.mxu0 %v120_v60  ;;  %v154_v60 = vld [vmem:[#allocation2 + $0x2f0] sm:$0xff] }
  0xd2   :  { %3332 = vmatmul.mubr.f32.gmra.mrb[60].mxu0 %v121_v61  ;;  %v155_v61 = vld [vmem:[#allocation2 + $0x2f8] sm:$0xff] }
  0xd3   :  { %3334 = vmatprep.mubr.f32.mxu0 %v122_v62  ;;  %v156_v62 = vld [vmem:[#allocation2 + $0x300] sm:$0xff] }
  0xd6   :  { %3335 = vmatmul.mubr.f32.gmra.mrb[62].mxu0 %v123_v63  ;;  %v157_v63 = vld [vmem:[#allocation2 + $0x308] sm:$0xff] }
  0xd7   :  { %3337 = vmatprep.mubr.f32.mxu0 %v124_v0  ;;  %v158_v0 = vld [vmem:[#allocation2 + $0x310] sm:$0xff] }
  0xda   :  { %3338 = vmatmul.mubr.f32.gmra.mrb[64].mxu0 %v125_v1  ;;  %v159_v1 = vld [vmem:[#allocation2 + $0x318] sm:$0xff] }
  0xdb   :  { %3340 = vmatprep.mubr.f32.mxu0 %v126_v2  ;;  %v160_v2 = vld [vmem:[#allocation2 + $0x320] sm:$0xff] }
  0xde   :  { %3341 = vmatmul.mubr.f32.gmra.mrb[66].mxu0 %v127_v3  ;;  %v161_v3 = vld [vmem:[#allocation2 + $0x328] sm:$0xff] }
  0xdf   :  { %3343 = vmatprep.mubr.f32.mxu0 %v128_v4  ;;  %v162_v4 = vld [vmem:[#allocation2 + $0x330] sm:$0xff] }
  0xe2   :  { %3344 = vmatmul.mubr.f32.gmra.mrb[68].mxu0 %v129_v5  ;;  %v163_v5 = vld [vmem:[#allocation2 + $0x338] sm:$0xff] }
  0xe3   :  { %3346 = vmatprep.mubr.f32.mxu0 %v130_v6  ;;  %v164_v6 = vld [vmem:[#allocation2 + $0x340] sm:$0xff] }
  0xe6   :  { %3347 = vmatmul.mubr.f32.gmra.mrb[70].mxu0 %v131_v7  ;;  %v165_v7 = vld [vmem:[#allocation2 + $0x348] sm:$0xff] }
  0xe7   :  { %3349 = vmatprep.mubr.f32.mxu0 %v132_v8  ;;  %v166_v8 = vld [vmem:[#allocation2 + $0x350] sm:$0xff] }
  0xea   :  { %3350 = vmatmul.mubr.f32.gmra.mrb[72].mxu0 %v133_v9  ;;  %v167_v9 = vld [vmem:[#allocation2 + $0x358] sm:$0xff] }
  0xeb   :  { %3352 = vmatprep.mubr.f32.mxu0 %v134_v10  ;;  %v168_v10 = vld [vmem:[#allocation2 + $0x360] sm:$0xff] }
  0xee   :  { %3353 = vmatmul.mubr.f32.gmra.mrb[74].mxu0 %v135_v11 }
  0xef   :  { %3355 = vmatprep.mubr.f32.mxu0 %v136_v19 }
  0xf2   :  { %3356 = vmatmul.mubr.f32.gmra.mrb[76].mxu0 %v137_v20  ;;  %v169_v20 = vld [vmem:[#allocation2 + $0x368] sm:$0xff] }
  0xf3   :  { %3358 = vmatprep.mubr.f32.mxu0 %v138_v26  ;;  %v170_v26 = vld [vmem:[#allocation2 + $0x370] sm:$0xff] }
  0xf6   :  { %3359 = vmatmul.mubr.f32.gmra.mrb[78].mxu0 %v139_v44 }
  0xf7   :  { %3361 = vmatprep.mubr.f32.mxu0 %v140_v46 }
  0xfa   :  { %3362 = vmatmul.mubr.f32.gmra.mrb[80].mxu0 %v141_v47  ;;  %v171_v47 = vld [vmem:[#allocation2 + $0x378] sm:$0xff] }
  0xfb   :  { %3364 = vmatprep.mubr.f32.mxu0 %v142_v48  ;;  %v172_v48 = vld [vmem:[#allocation2 + $0x380] sm:$0xff] }
  0xfe   :  { %3365 = vmatmul.mubr.f32.gmra.mrb[82].mxu0 %v143_v49 }
  0xff   :  { %3367 = vmatprep.mubr.f32.mxu0 %v144_v50 }
 0x102   :  { %3368 = vmatmul.mubr.f32.gmra.mrb[84].mxu0 %v145_v51  ;;  %v4602_v51 = vld [vmem:[%s5306_s3] ss:$0 sm:$0xff] }
 0x103   :  { %3370 = vmatprep.mubr.f32.mxu0 %v146_v52  ;;  %v173_v52 = vld [vmem:[#allocation2 + $0x388] sm:$0xff] }
 0x106   :  { %3371 = vmatmul.mubr.f32.gmra.mrb[86].mxu0 %v147_v53 }
 0x107   :  { %3373 = vmatprep.mubr.f32.mxu0 %v148_v54  ;;  %v174_v54 = vld [vmem:[#allocation2 + $0x390] sm:$0xff] }
 0x10a   :  { %3374 = vmatmul.mubr.f32.gmra.mrb[88].mxu0 %v149_v55 }
 0x10b   :  { %3376 = vmatprep.mubr.f32.mxu0 %v150_v56 }
 0x10e   :  { %3377 = vmatmul.mubr.f32.gmra.mrb[90].mxu0 %v151_v57 }
 0x10f   :  { %3379 = vmatprep.mubr.f32.mxu0 %v152_v58 }
 0x112   :  { %3380 = vmatmul.mubr.f32.gmra.mrb[92].mxu0 %v153_v59  ;;  %v175_v59 = vld [vmem:[#allocation2 + $0x398] sm:$0xff] }
 0x113   :  { %3382 = vmatprep.mubr.f32.mxu0 %v154_v60  ;;  %v176_v60 = vld [vmem:[#allocation2 + $0x3a0] sm:$0xff] }
 0x116   :  { %3383 = vmatmul.mubr.f32.gmra.mrb[94].mxu0 %v155_v61 }
 0x117   :  { %3385 = vmatprep.mubr.f32.mxu0 %v156_v62 }
 0x11a   :  { %3386 = vmatmul.mubr.f32.gmra.mrb[96].mxu0 %v157_v63 }
 0x11b   :  { %3388 = vmatprep.mubr.f32.mxu0 %v158_v0 }
 0x11e   :  { %3389 = vmatmul.mubr.f32.gmra.mrb[98].mxu0 %v159_v1  ;;  %v177_v1 = vld [vmem:[#allocation2 + $0x3a8] sm:$0xff] }
 0x11f   :  { %3391 = vmatprep.mubr.f32.mxu0 %v160_v2 }
 0x122   :  { %3392 = vmatmul.mubr.f32.gmra.mrb[100].mxu0 %v161_v3 }
 0x123   :  { %3394 = vmatprep.mubr.f32.mxu0 %v162_v4 }
 0x126   :  { %3395 = vmatmul.mubr.f32.gmra.mrb[102].mxu0 %v163_v5 }
 0x127   :  { %3397 = vmatprep.mubr.f32.mxu0 %v164_v6 }
 0x12a   :  { %3398 = vmatmul.mubr.f32.gmra.mrb[104].mxu0 %v165_v7  ;;  %v178_v7 = vld [vmem:[#allocation2 + $0x3b0] sm:$0xff] }
 0x12b   :  { %3400 = vmatprep.mubr.f32.mxu0 %v166_v8 }
 0x12d   :  { %v3243_v11 = vpop.f32.mrb[0].mxu0 }
 0x12e   :  { %3948 = vtanh.f32 %v3243_v11  ;;  %v270_v19 = vpop.f32.mrb[1].mxu0  ;;  %3401 = vmatmul.mubr.f32.gmra.mrb[106].mxu0 %v167_v9 }
 0x12f   :  { %3403 = vmatprep.mubr.f32.mxu0 %v168_v10  ;;  %3950 = vtanh.f32 %v270_v19  ;;  %v179_v10 = vld [vmem:[#allocation2 + $0x3b8] sm:$0xff] }
 0x131   :  { %v3246_v44 = vpop.f32.mrb[2].mxu0 }
 0x132   :  { %v280_v46 = vpop.f32.mrb[3].mxu0  ;;  %3404 = vmatmul.mubr.f32.gmra.mrb[108].mxu0 %v169_v20  ;;  %3952 = vtanh.f32 %v3246_v44 }
 0x133   :  { %3406 = vmatprep.mubr.f32.mxu0 %v170_v26  ;;  %v180_v26 = vld [vmem:[#allocation2 + $0x3c0] sm:$0xff] }
 0x135   :  { %v3249_v49 = vpop.f32.mrb[4].mxu0 }
 0x136   :  { %3954 = vtanh.f32 %v3249_v49  ;;  %v290_v50 = vpop.f32.mrb[5].mxu0  ;;  %3407 = vmatmul.mubr.f32.gmra.mrb[110].mxu0 %v171_v47  ;;  %v181_v47 = vld [vmem:[#allocation2 + $0x3c8] sm:$0xff] }
 0x137   :  { %3956 = vtanh.f32 %v280_v46  ;;  %3409 = vmatprep.mubr.f32.mxu0 %v172_v48 }
 0x138   :  { %v3949_v53 = vpop.eup %3948  ;;  %3958 = vtanh.f32 %v290_v50 }
 0x139   :  { %v3252_v55 = vpop.f32.mrb[6].mxu0  ;;  %v1045_v56 = vmul.f32 %v3949_v53, %v4602_v51  ;;  %v3951_v57 = vpop.eup %3950 }
 0x13a   :  { %v300_v58 = vpop.f32.mrb[7].mxu0  ;;  %3410 = vmatmul.mubr.f32.gmra.mrb[112].mxu0 %v173_v52  ;;  %3960 = vtanh.f32 %v3252_v55  ;;  %v1044_v62 = vmul.f32 %v3951_v57, %v4602_v51  ;;  %v183_v57 = vld [vmem:[#allocation2 + $0x3d8] sm:$0xff] }
 0x13b   :  { %1174 = vadd.xlane.f32.xlu0 %v1045_v56  ;;  %3412 = vmatprep.mubr.f32.mxu0 %v174_v54  ;;  %v182_v54 = vld [vmem:[#allocation2 + $0x3d0] sm:$0xff] }
 0x13c   :  { %v3953_v63 = vpop.eup %3952 }
 0x13d   :  { %v3255_v61 = vpop.f32.mrb[8].mxu0  ;;  %v1047_v5 = vmul.f32 %v3953_v63, %v4602_v51 }
 0x13e   :  { %3962 = vtanh.f32 %v3255_v61  ;;  %v310_v0 = vpop.f32.mrb[9].mxu0  ;;  %3413 = vmatmul.mubr.f32.gmra.mrb[114].mxu0 %v175_v59  ;;  %v184_v61 = vld [vmem:[#allocation2 + $0x3e0] sm:$0xff] }
 0x13f   :  { %3964 = vtanh.f32 %v300_v58  ;;  %1172 = vadd.xlane.f32.xlu0 %v1044_v62  ;;  %3415 = vmatprep.mubr.f32.mxu0 %v176_v60 }
 0x140   :  { %v3955_v2 = vpop.eup %3954  ;;  %3966 = vtanh.f32 %v310_v0  ;;  %v185_v0 = vld [vmem:[#allocation2 + $0x3e8] sm:$0xff] }
 0x141   :  { %v3957_v3 = vpop.eup %3956  ;;  %v3258_v4 = vpop.f32.mrb[10].mxu0  ;;  %v1049_v6 = vmul.f32 %v3955_v2, %v4602_v51 }
 0x142   :  { %v3959_v8 = vpop.eup %3958  ;;  %v320_v9 = vpop.f32.mrb[11].mxu0  ;;  %3416 = vmatmul.mubr.f32.gmra.mrb[116].mxu0 %v177_v1  ;;  %3968 = vtanh.f32 %v3258_v4  ;;  %v1046_v19 = vmul.f32 %v3957_v3, %v4602_v51  ;;  %v186_v1 = vld [vmem:[#allocation2 + $0x3f0] sm:$0xff] }
 0x143   :  { %1178 = vadd.xlane.f32.xlu0 %v1047_v5  ;;  %1182 = vadd.xlane.f32.xlu1 %v1049_v6  ;;  %v1048_v20 = vmul.f32 %v3959_v8, %v4602_v51  ;;  %3970 = vtanh.f32 %v320_v9  ;;  %v187_v6 = vld [vmem:[#allocation2 + $0x3f8] sm:$0xff] }
 0x144   :  { %3418 = vmatprep.mubr.f32.mxu0 %v178_v7  ;;  %v3961_v44 = vpop.eup %3960 }
 0x145   :  { %v3261_v11 = vpop.f32.mrb[12].mxu0  ;;  %v1051_v52 = vmul.f32 %v3961_v44, %v4602_v51 }
 0x146   :  { %v330_v46 = vpop.f32.mrb[13].mxu0  ;;  %3419 = vmatmul.mubr.f32.gmra.mrb[118].mxu0 %v179_v10  ;;  %3972 = vtanh.f32 %v3261_v11 }
 0x147   :  { %1176 = vadd.xlane.f32.xlu0 %v1046_v19  ;;  %1180 = vadd.xlane.f32.xlu1 %v1048_v20  ;;  %3974 = vtanh.f32 %v330_v46 }
 0x148   :  { %v3963_v48 = vpop.eup %3962  ;;  %3421 = vmatprep.mubr.f32.mxu0 %v180_v26 }
 0x149   :  { %v3965_v49 = vpop.eup %3964  ;;  %v3264_v50 = vpop.f32.mrb[14].mxu0  ;;  %v1053_v53 = vmul.f32 %v3963_v48, %v4602_v51 }
 0x14a   :  { %v3967_v55 = vpop.eup %3966  ;;  %v340_v56 = vpop.f32.mrb[15].mxu0  ;;  %3422 = vmatmul.mubr.f32.gmra.mrb[120].mxu0 %v181_v47  ;;  %v1050_v59 = vmul.f32 %v3965_v49, %v4602_v51  ;;  %3976 = vtanh.f32 %v3264_v50 }
 0x14b   :  { %1186 = vadd.xlane.f32.xlu0 %v1051_v52  ;;  %1190 = vadd.xlane.f32.xlu1 %v1053_v53  ;;  %v1052_v60 = vmul.f32 %v3967_v55, %v4602_v51 }
 0x14c   :  { %3424 = vmatprep.mubr.f32.mxu0 %v182_v54  ;;  %v3969_v62 = vpop.eup %3968 }
 0x14d   :  { %v3267_v58 = vpop.f32.mrb[16].mxu0  ;;  %v1055_v3 = vmul.f32 %v3969_v62, %v4602_v51  ;;  %v3971_v4 = vpop.eup %3970 }
 0x14e   :  { %v350_v63 = vpop.f32.mrb[17].mxu0  ;;  %3425 = vmatmul.mubr.f32.gmra.mrb[122].mxu0 %v183_v57  ;;  %v1054_v8 = vmul.f32 %v3971_v4, %v4602_v51 }
 0x14f   :  { %1184 = vadd.xlane.f32.xlu0 %v1050_v59  ;;  %1188 = vadd.xlane.f32.xlu1 %v1052_v60 }
 0x150   :  { %3427 = vmatprep.mubr.f32.mxu0 %v184_v61  ;;  %v3973_v9 = vpop.eup %3972 }
 0x151   :  { %v3270_v2 = vpop.f32.mrb[18].mxu0  ;;  %v1057_v19 = vmul.f32 %v3973_v9, %v4602_v51  ;;  %v3975_v20 = vpop.eup %3974 }
 0x152   :  { %v360_v5 = vpop.f32.mrb[19].mxu0  ;;  %3428 = vmatmul.mubr.f32.gmra.mrb[124].mxu0 %v185_v0  ;;  %v1056_v46 = vmul.f32 %v3975_v20, %v4602_v51 }
 0x153   :  { %1194 = vadd.xlane.f32.xlu1 %v1055_v3  ;;  %3430 = vmatprep.mubr.f32.mxu0 %v186_v1 }
 0x154   :  { %v3977_v47 = vpop.eup %3976 }
 0x155   :  { %v3273_v7 = vpop.f32.mrb[20].mxu0  ;;  %v1059_v53 = vmul.f32 %v3977_v47, %v4602_v51 }
 0x156   :  { %3978 = vtanh.f32 %v3273_v7  ;;  %v370_v10 = vpop.f32.mrb[21].mxu0  ;;  %3431 = vmatmul.mubr.f32.gmra.mrb[126].mxu0 %v187_v6 }
 0x157   :  { %3980 = vtanh.f32 %v340_v56  ;;  %1192 = vadd.xlane.f32.xlu1 %v1054_v8 }
 0x158   :  { %3982 = vtanh.f32 %v370_v10 }
 0x159   :  { %v3276_v11 = vpop.f32.mrb[22].mxu0  ;;  %3984 = vtanh.f32 %v3267_v58 }
 0x15a   :  { %v380_v26 = vpop.f32.mrb[23].mxu0 }
 0x15b   :  { %1198 = vadd.xlane.f32.xlu1 %v1057_v19 }
 0x15d   :  { %v3279_v44 = vpop.f32.mrb[24].mxu0 }
 0x15e   :  { %3986 = vtanh.f32 %v3279_v44  ;;  %v390_v48 = vpop.f32.mrb[25].mxu0 }
 0x15f   :  { %3988 = vtanh.f32 %v350_v63  ;;  %1196 = vadd.xlane.f32.xlu1 %v1056_v46 }
 0x160   :  { %v3979_v49 = vpop.eup %3978  ;;  %3990 = vtanh.f32 %v390_v48 }
 0x161   :  { %v3981_v50 = vpop.eup %3980  ;;  %v3282_v52 = vpop.f32.mrb[26].mxu0  ;;  %v1065_v54 = vmul.f32 %v3979_v49, %v4602_v51  ;;  %3992 = vtanh.f32 %v3270_v2 }
 0x162   :  { %v3983_v55 = vpop.eup %3982  ;;  %v400_v56 = vpop.f32.mrb[27].mxu0  ;;  %3994 = vtanh.f32 %v3282_v52  ;;  %v1058_v58 = vmul.f32 %v3981_v50, %v4602_v51 }
 0x163   :  { %1202 = vadd.xlane.f32.xlu1 %v1059_v53  ;;  %1214 = vadd.xlane.f32.xlu0 %v1065_v54  ;;  %v1064_v59 = vmul.f32 %v3983_v55, %v4602_v51  ;;  %v3985_v60 = vpop.eup %3984  ;;  %3996 = vtanh.f32 %v360_v5 }
 0x164   :  { %3998 = vtanh.f32 %v400_v56  ;;  %v1061_v1 = vmul.f32 %v3985_v60, %v4602_v51 }
 0x165   :  { %v3285_v57 = vpop.f32.mrb[28].mxu0  ;;  %4000 = vtanh.f32 %v3276_v11 }
 0x166   :  { %v410_v61 = vpop.f32.mrb[29].mxu0  ;;  %4002 = vtanh.f32 %v3285_v57 }
 0x167   :  { %1200 = vadd.xlane.f32.xlu1 %v1058_v58  ;;  %1212 = vadd.xlane.f32.xlu0 %v1064_v59  ;;  %4004 = vtanh.f32 %v380_v26 }
 0x168   :  { %v3987_v62 = vpop.eup %3986  ;;  %4006 = vtanh.f32 %v410_v61 }
 0x169   :  { %v3989_v63 = vpop.eup %3988  ;;  %v3288_v0 = vpop.f32.mrb[30].mxu0  ;;  %v1069_v2 = vmul.f32 %v3987_v62, %v4602_v51 }
 0x16a   :  { %v3991_v3 = vpop.eup %3990  ;;  %v420_v4 = vpop.f32.mrb[31].mxu0  ;;  %v1060_v5 = vmul.f32 %v3989_v63, %v4602_v51  ;;  %4008 = vtanh.f32 %v3288_v0 }
 0x16b   :  { %1206 = vadd.xlane.f32.xlu1 %v1061_v1  ;;  %1222 = vadd.xlane.f32.xlu0 %v1069_v2  ;;  %v3993_v6 = vpop.eup %3992  ;;  %v1068_v8 = vmul.f32 %v3991_v3, %v4602_v51 }
 0x16c   :  { %v3995_v9 = vpop.eup %3994  ;;  %v1063_v44 = vmul.f32 %v3993_v6, %v4602_v51 }
 0x16d   :  { %v3291_v7 = vpop.f32.mrb[32].mxu0  ;;  %v3997_v19 = vpop.eup %3996  ;;  %v1071_v11 = vmul.f32 %v3995_v9, %v4602_v51 }
 0x16e   :  { %v430_v10 = vpop.f32.mrb[33].mxu0  ;;  %v3999_v46 = vpop.eup %3998  ;;  %4010 = vtanh.f32 %v3291_v7  ;;  %v1062_v50 = vmul.f32 %v3997_v19, %v4602_v51 }
 0x16f   :  { %1204 = vadd.xlane.f32.xlu1 %v1060_v5  ;;  %1220 = vadd.xlane.f32.xlu0 %v1068_v8  ;;  %v4001_v48 = vpop.eup %4000  ;;  %v1070_v26 = vmul.f32 %v3999_v46, %v4602_v51  ;;  %4012 = vtanh.f32 %v420_v4 }
 0x170   :  { %v4003_v52 = vpop.eup %4002  ;;  %v1067_v56 = vmul.f32 %v4001_v48, %v4602_v51 }
 0x171   :  { %v3294_v20 = vpop.f32.mrb[34].mxu0  ;;  %v4005_v54 = vpop.eup %4004  ;;  %v1073_v57 = vmul.f32 %v4003_v52, %v4602_v51 }
 0x172   :  { %v440_v47 = vpop.f32.mrb[35].mxu0  ;;  %4014 = vtanh.f32 %v3294_v20  ;;  %v4007_v58 = vpop.eup %4006  ;;  %v1066_v62 = vmul.f32 %v4005_v54, %v4602_v51 }
 0x173   :  { %1210 = vadd.xlane.f32.xlu1 %v1063_v44  ;;  %1226 = vadd.xlane.f32.xlu0 %v1071_v11  ;;  %4016 = vtanh.f32 %v430_v10  ;;  %v1072_v63 = vmul.f32 %v4007_v58, %v4602_v51 }
 0x174   :  { %v4009_v60 = vpop.eup %4008 }
 0x175   :  { %v3297_v49 = vpop.f32.mrb[36].mxu0  ;;  %v1075_v4 = vmul.f32 %v4009_v60, %v4602_v51 }
 0x176   :  { %v450_v53 = vpop.f32.mrb[37].mxu0 }
 0x177   :  { %1208 = vadd.xlane.f32.xlu1 %v1062_v50  ;;  %1224 = vadd.xlane.f32.xlu0 %v1070_v26  ;;  %4018 = vtanh.f32 %v450_v53 }
 0x178   :  { %v4011_v0 = vpop.eup %4010  ;;  %4020 = vtanh.f32 %v440_v47 }
 0x179   :  { %v3300_v55 = vpop.f32.mrb[38].mxu0  ;;  %v4013_v2 = vpop.eup %4012  ;;  %v1077_v6 = vmul.f32 %v4011_v0, %v4602_v51 }
 0x17a   :  { %v460_v59 = vpop.f32.mrb[39].mxu0  ;;  %4022 = vtanh.f32 %v3300_v55  ;;  %v1074_v10 = vmul.f32 %v4013_v2, %v4602_v51 }
 0x17b   :  { %1218 = vadd.xlane.f32.xlu1 %v1067_v56  ;;  %1230 = vadd.xlane.f32.xlu0 %v1073_v57  ;;  %4024 = vtanh.f32 %v3297_v49 }
 0x17c   :  { %v4015_v7 = vpop.eup %4014 }
 0x17d   :  { %v3303_v61 = vpop.f32.mrb[40].mxu0  ;;  %v4017_v8 = vpop.eup %4016  ;;  %v1079_v19 = vmul.f32 %v4015_v7, %v4602_v51 }
 0x17e   :  { %v470_v1 = vpop.f32.mrb[41].mxu0  ;;  %4026 = vtanh.f32 %v3303_v61  ;;  %v1076_v47 = vmul.f32 %v4017_v8, %v4602_v51 }
 0x17f   :  { %1216 = vadd.xlane.f32.xlu1 %v1066_v62  ;;  %1228 = vadd.xlane.f32.xlu0 %v1072_v63  ;;  %4028 = vtanh.f32 %v460_v59 }
 0x180   :  { %4030 = vtanh.f32 %v470_v1 }
 0x181   :  { %v3306_v3 = vpop.f32.mrb[42].mxu0  ;;  %v4019_v20 = vpop.eup %4018 }
 0x182   :  { %v480_v5 = vpop.f32.mrb[43].mxu0  ;;  %v4021_v11 = vpop.eup %4020  ;;  %v1080_v48 = vmul.f32 %v4019_v20, %v4602_v51  ;;  %4032 = vtanh.f32 %v3306_v3 }
 0x183   :  { %1234 = vadd.xlane.f32.xlu0 %v1075_v4  ;;  %1238 = vadd.xlane.f32.xlu1 %v1077_v6  ;;  %v1078_v53 = vmul.f32 %v4021_v11, %v4602_v51 }
 0x184   :  { %v4023_v49 = vpop.eup %4022 }
 0x185   :  { %v3309_v9 = vpop.f32.mrb[44].mxu0  ;;  %v4025_v26 = vpop.eup %4024  ;;  %v1083_v54 = vmul.f32 %v4023_v49, %v4602_v51 }
 0x186   :  { %v490_v44 = vpop.f32.mrb[45].mxu0  ;;  %v1081_v59 = vmul.f32 %v4025_v26, %v4602_v51 }
 0x187   :  { %1232 = vadd.xlane.f32.xlu0 %v1074_v10  ;;  %1242 = vadd.xlane.f32.xlu1 %v1079_v19 }
 0x188   :  { %v4027_v55 = vpop.eup %4026 }
 0x189   :  { %v3312_v46 = vpop.f32.mrb[46].mxu0  ;;  %v4029_v57 = vpop.eup %4028  ;;  %v1085_v60 = vmul.f32 %v4027_v55, %v4602_v51 }
 0x18a   :  { %v500_v50 = vpop.f32.mrb[47].mxu0  ;;  %v4031_v61 = vpop.eup %4030  ;;  %v1082_v0 = vmul.f32 %v4029_v57, %v4602_v51 }
 0x18b   :  { %1236 = vadd.xlane.f32.xlu0 %v1076_v47  ;;  %1244 = vadd.xlane.f32.xlu1 %v1080_v48  ;;  %v1084_v1 = vmul.f32 %v4031_v61, %v4602_v51 }
 0x18c   :  { %v4033_v2 = vpop.eup %4032 }
 0x18d   :  { %v3315_v52 = vpop.f32.mrb[48].mxu0  ;;  %v1087_v7 = vmul.f32 %v4033_v2, %v4602_v51 }
 0x18e   :  { %4034 = vtanh.f32 %v3315_v52  ;;  %v510_v56 = vpop.f32.mrb[49].mxu0 }
 0x18f   :  { %1240 = vadd.xlane.f32.xlu0 %v1078_v53  ;;  %1250 = vadd.xlane.f32.xlu1 %v1083_v54  ;;  %4036 = vtanh.f32 %v480_v5 }
 0x191   :  { %v3318_v58 = vpop.f32.mrb[50].mxu0 }
 0x192   :  { %4038 = vtanh.f32 %v3318_v58  ;;  %v520_v62 = vpop.f32.mrb[51].mxu0 }
 0x193   :  { %4040 = vtanh.f32 %v3309_v9  ;;  %1246 = vadd.xlane.f32.xlu0 %v1081_v59  ;;  %1254 = vadd.xlane.f32.xlu1 %v1085_v60 }
 0x194   :  { %4042 = vtanh.f32 %v520_v62 }
 0x195   :  { %v3321_v63 = vpop.f32.mrb[52].mxu0  ;;  %4044 = vtanh.f32 %v490_v44 }
 0x196   :  { %v530_v3 = vpop.f32.mrb[53].mxu0 }
 0x197   :  { %1248 = vadd.xlane.f32.xlu0 %v1082_v0  ;;  %1252 = vadd.xlane.f32.xlu1 %v1084_v1 }
 0x198   :  { %v4035_v4 = vpop.eup %4034 }
 0x199   :  { %v3324_v6 = vpop.f32.mrb[54].mxu0  ;;  %v1093_v5 = vmul.f32 %v4035_v4, %v4602_v51  ;;  %v4037_v8 = vpop.eup %4036 }
 0x19a   :  { %4046 = vtanh.f32 %v3324_v6  ;;  %v540_v9 = vpop.f32.mrb[55].mxu0  ;;  %v1086_v11 = vmul.f32 %v4037_v8, %v4602_v51 }
 0x19b   :  { %4048 = vtanh.f32 %v3312_v46  ;;  %1258 = vadd.xlane.f32.xlu1 %v1087_v7  ;;  %1270 = vadd.xlane.f32.xlu0 %v1093_v5 }
 0x19c   :  { %v4039_v10 = vpop.eup %4038  ;;  %4050 = vtanh.f32 %v540_v9 }
 0x19d   :  { %v4041_v19 = vpop.eup %4040  ;;  %v3327_v20 = vpop.f32.mrb[56].mxu0  ;;  %v1095_v47 = vmul.f32 %v4039_v10, %v4602_v51  ;;  %4052 = vtanh.f32 %v500_v50 }
 0x19e   :  { %v4043_v44 = vpop.eup %4042  ;;  %v550_v48 = vpop.f32.mrb[57].mxu0  ;;  %4054 = vtanh.f32 %v3327_v20  ;;  %v1089_v26 = vmul.f32 %v4041_v19, %v4602_v51 }
 0x19f   :  { %1256 = vadd.xlane.f32.xlu1 %v1086_v11  ;;  %1274 = vadd.xlane.f32.xlu0 %v1095_v47  ;;  %v1094_v46 = vmul.f32 %v4043_v44, %v4602_v51  ;;  %v4045_v52 = vpop.eup %4044  ;;  %4056 = vtanh.f32 %v510_v56 }
 0x1a0   :  { %4058 = vtanh.f32 %v550_v48  ;;  %v1088_v58 = vmul.f32 %v4045_v52, %v4602_v51 }
 0x1a1   :  { %v3330_v49 = vpop.f32.mrb[58].mxu0  ;;  %4060 = vtanh.f32 %v3321_v63 }
 0x1a2   :  { %v560_v53 = vpop.f32.mrb[59].mxu0  ;;  %4062 = vtanh.f32 %v3330_v49 }
 0x1a3   :  { %1262 = vadd.xlane.f32.xlu1 %v1089_v26  ;;  %1272 = vadd.xlane.f32.xlu0 %v1094_v46  ;;  %4064 = vtanh.f32 %v530_v3 }
 0x1a4   :  { %v4047_v54 = vpop.eup %4046  ;;  %4066 = vtanh.f32 %v560_v53 }
 0x1a5   :  { %v4049_v55 = vpop.eup %4048  ;;  %v3333_v57 = vpop.f32.mrb[60].mxu0  ;;  %v1099_v50 = vmul.f32 %v4047_v54, %v4602_v51 }
 0x1a6   :  { %v4051_v59 = vpop.eup %4050  ;;  %v570_v60 = vpop.f32.mrb[61].mxu0  ;;  %v1091_v56 = vmul.f32 %v4049_v55, %v4602_v51  ;;  %4068 = vtanh.f32 %v3333_v57 }
 0x1a7   :  { %1260 = vadd.xlane.f32.xlu1 %v1088_v58  ;;  %1282 = vadd.xlane.f32.xlu0 %v1099_v50  ;;  %v4053_v61 = vpop.eup %4052  ;;  %v1098_v0 = vmul.f32 %v4051_v59, %v4602_v51 }
 0x1a8   :  { %v4055_v1 = vpop.eup %4054  ;;  %v1090_v7 = vmul.f32 %v4053_v61, %v4602_v51 }
 0x1a9   :  { %v3336_v62 = vpop.f32.mrb[62].mxu0  ;;  %v4057_v4 = vpop.eup %4056  ;;  %v1101_v63 = vmul.f32 %v4055_v1, %v4602_v51 }
 0x1aa   :  { %v580_v2 = vpop.f32.mrb[63].mxu0  ;;  %v4059_v5 = vpop.eup %4058  ;;  %4070 = vtanh.f32 %v3336_v62  ;;  %v1092_v19 = vmul.f32 %v4057_v4, %v4602_v51 }
 0x1ab   :  { %1266 = vadd.xlane.f32.xlu1 %v1091_v56  ;;  %1280 = vadd.xlane.f32.xlu0 %v1098_v0  ;;  %v4061_v9 = vpop.eup %4060  ;;  %v1100_v3 = vmul.f32 %v4059_v5, %v4602_v51  ;;  %4072 = vtanh.f32 %v570_v60 }
 0x1ac   :  { %v4063_v20 = vpop.eup %4062  ;;  %v1097_v48 = vmul.f32 %v4061_v9, %v4602_v51 }
 0x1ad   :  { %v3339_v6 = vpop.f32.mrb[64].mxu0  ;;  %v4065_v47 = vpop.eup %4064  ;;  %v1103_v49 = vmul.f32 %v4063_v20, %v4602_v51 }
 0x1ae   :  { %v590_v8 = vpop.f32.mrb[65].mxu0  ;;  %v4067_v26 = vpop.eup %4066  ;;  %v1096_v54 = vmul.f32 %v4065_v47, %v4602_v51 }
 0x1af   :  { %1264 = vadd.xlane.f32.xlu1 %v1090_v7  ;;  %1286 = vadd.xlane.f32.xlu0 %v1101_v63  ;;  %4074 = vtanh.f32 %v590_v8  ;;  %v1102_v55 = vmul.f32 %v4067_v26, %v4602_v51  ;;  %v1558_v63 = vlaneseq }
 0x1b0   :  { %4076 = vtanh.f32 %v580_v2  ;;  %v4069_v52 = vpop.eup %4068 }
 0x1b1   :  { %v3342_v10 = vpop.f32.mrb[66].mxu0  ;;  %v1105_v60 = vmul.f32 %v4069_v52, %v4602_v51  ;;  %v4676_v20 = vand.u32 127, %v1558_v63  ;;  %v4682_v52 = vshrl.u32 %v1558_v63, 7 }
 0x1b2   :  { %v600_v11 = vpop.f32.mrb[67].mxu0 }
 0x1b3   :  { %1268 = vadd.xlane.f32.xlu1 %v1092_v19  ;;  %1284 = vadd.xlane.f32.xlu0 %v1100_v3  ;;  %4078 = vtanh.f32 %v600_v11 }
 0x1b4   :  { %v4071_v57 = vpop.eup %4070  ;;  %4080 = vtanh.f32 %v3339_v6 }
 0x1b5   :  { %v3345_v44 = vpop.f32.mrb[68].mxu0  ;;  %v4073_v50 = vpop.eup %4072  ;;  %v1107_v61 = vmul.f32 %v4071_v57, %v4602_v51 }
 0x1b6   :  { %v610_v46 = vpop.f32.mrb[69].mxu0  ;;  %4082 = vtanh.f32 %v3345_v44  ;;  %v1104_v2 = vmul.f32 %v4073_v50, %v4602_v51 }
 0x1b7   :  { %1278 = vadd.xlane.f32.xlu1 %v1097_v48  ;;  %1290 = vadd.xlane.f32.xlu0 %v1103_v49  ;;  %4084 = vtanh.f32 %v3342_v10 }
 0x1b9   :  { %v3348_v53 = vpop.f32.mrb[70].mxu0  ;;  %v4075_v62 = vpop.eup %4074 }
 0x1ba   :  { %v620_v58 = vpop.f32.mrb[71].mxu0  ;;  %4086 = vtanh.f32 %v3348_v53  ;;  %v4077_v0 = vpop.eup %4076  ;;  %v1108_v4 = vmul.f32 %v4075_v62, %v4602_v51  ;;  %v1564_v53 = vadd.s32 4294967288, %v4676_v20 }
 0x1bb   :  { %1276 = vadd.xlane.f32.xlu1 %v1096_v54  ;;  %1288 = vadd.xlane.f32.xlu0 %v1102_v55  ;;  %4088 = vtanh.f32 %v610_v46  ;;  %v1106_v9 = vmul.f32 %v4077_v0, %v4602_v51  ;;  %v1592_v0 = vadd.s32 4294967256, %v4676_v20 }
 0x1bc   :  { %4090 = vtanh.f32 %v620_v58 }
 0x1bd   :  { %v3351_v59 = vpop.f32.mrb[72].mxu0  ;;  %v4079_v6 = vpop.eup %4078 }
 0x1be   :  { %v630_v56 = vpop.f32.mrb[73].mxu0  ;;  %v4081_v5 = vpop.eup %4080  ;;  %v1110_v10 = vmul.f32 %v4079_v6, %v4602_v51  ;;  %4092 = vtanh.f32 %v3351_v59  ;;  %v1571_v59 = vadd.s32 4294967280, %v4676_v20 }
 0x1bf   :  { %1294 = vadd.xlane.f32.xlu0 %v1105_v60  ;;  %1298 = vadd.xlane.f32.xlu1 %v1107_v61  ;;  %v1109_v48 = vmul.f32 %v4081_v5, %v4602_v51  ;;  %v4692_v61 = vsub.s32 %v4676_v20, %v4682_v52 }
 0x1c0   :  { %v4083_v19 = vpop.eup %4082 }
 0x1c1   :  { %v3354_v1 = vpop.f32.mrb[74].mxu0  ;;  %v4085_v47 = vpop.eup %4084  ;;  %v1113_v49 = vmul.f32 %v4083_v19, %v4602_v51 }
 0x1c2   :  { %v4668_v7 = vpop.f32.mrb[75].mxu0  ;;  %v1111_v58 = vmul.f32 %v4085_v47, %v4602_v51 }
 0x1c3   :  { %1292 = vadd.xlane.f32.xlu0 %v1104_v2  ;;  %1300 = vadd.xlane.f32.xlu1 %v1108_v4  ;;  %v1585_v2 = vadd.s32 4294967264, %v4676_v20  ;;  %v4698_v4 = vsub.s32 %v1564_v53, %v4682_v52 }
 0x1c4   :  { %v4087_v26 = vpop.eup %4086 }
 0x1c5   :  { %v4670_v8 = vpop.f32.mrb[76].mxu0  ;;  %v4089_v55 = vpop.eup %4088  ;;  %v1115_v50 = vmul.f32 %v4087_v26, %v4602_v51  ;;  %v4717_v26 = vsub.s32 %v1585_v2, %v4682_v52 }
 0x1c6   :  { %v4674_v3 = vpop.f32.mrb[77].mxu0  ;;  %v4091_v60 = vpop.eup %4090 }
 0x1c7   :  { %1296 = vadd.xlane.f32.xlu0 %v1106_v9  ;;  %1304 = vadd.xlane.f32.xlu1 %v1110_v10  ;;  %v1112_v9 = vmul.f32 %v4089_v55, %v4602_v51  ;;  %v1114_v10 = vmul.f32 %v4091_v60, %v4602_v51 }
 0x1c8   :  { %v4678_v11 = vpop.xlane.xlu0 %1174  ;;  %v4093_v19 = vpop.eup %4092 }
 0x1c9   :  { %v3360_v44 = vpop.f32.mrb[78].mxu0 }
 0x1ca   :  { %4094 = vtanh.f32 %v3360_v44  ;;  %v660_v46 = vpop.f32.mrb[79].mxu0 }
 0x1cb   :  { %4096 = vtanh.f32 %v630_v56  ;;  %1302 = vadd.xlane.f32.xlu0 %v1109_v48  ;;  %1310 = vadd.xlane.f32.xlu1 %v1113_v49  ;;  %v1578_v56 = vadd.s32 4294967272, %v4676_v20  ;;  %v4714_v49 = vsub.s32 %v1592_v0, %v4682_v52  ;;  %v1599_v0 = vadd.s32 4294967248, %v4676_v20 }
 0x1cc   :  { %4098 = vtanh.f32 %v660_v46  ;;  %v1173_v54 = vpop.xlane.xlu0 %1172  ;;  %v1606_v46 = vadd.s32 4294967240, %v4676_v20 }
 0x1cd   :  { %v4685_v57 = vpop.f32.mrb[80].mxu0  ;;  %4100 = vtanh.f32 %v3354_v1  ;;  %v4705_v1 = vsub.s32 %v1571_v59, %v4682_v52  ;;  %v1563_v47 = vrot.slane %v1173_v54, %v4692_v61  ;;  %v4709_v44 = vsub.s32 %v1578_v56, %v4682_v52 }
 0x1ce   :  { %v670_v62 = vpop.f32.mrb[81].mxu0  ;;  %v1568_v54 = vrot.slane %v4678_v11, %v4698_v4 }
 0x1cf   :  { %1306 = vadd.xlane.f32.xlu0 %v1111_v58  ;;  %1314 = vadd.xlane.f32.xlu1 %v1115_v50  ;;  %4102 = vtanh.f32 %v670_v62  ;;  %v1117_v62 = vmul.f32 %v4093_v19, %v4602_v51  ;;  %v1613_v19 = vadd.s32 4294967232, %v4676_v20 }
 0x1d0   :  { %v1179_v6 = vpop.xlane.xlu0 %1178  ;;  %v1183_v63 = vpop.xlane.xlu1 %1182  ;;  %4104 = vtanh.f32 %v4668_v7  ;;  %v1570_v7 = vsel %vm1569_vm0, %v1568_v54, %v1563_v47 }
 0x1d1   :  { %v4700_v5 = vpop.f32.mrb[82].mxu0 }
 0x1d2   :  { %v4711_v48 = vpop.f32.mrb[83].mxu0 }
 0x1d3   :  { %1308 = vadd.xlane.f32.xlu0 %v1112_v9  ;;  %1312 = vadd.xlane.f32.xlu1 %v1114_v10  ;;  %v1582_v9 = vrot.slane %v1179_v6, %v4709_v44  ;;  %v1620_v6 = vadd.s32 4294967224, %v4676_v20 }
 0x1d4   :  { %v4095_v53 = vpop.eup %4094  ;;  %v1177_v55 = vpop.xlane.xlu0 %1176 }
 0x1d5   :  { %v1181_v58 = vpop.xlane.xlu1 %1180  ;;  %v4097_v50 = vpop.eup %4096  ;;  %v1575_v59 = vrot.slane %v1177_v55, %v4705_v1  ;;  %v1123_v56 = vmul.f32 %v4095_v53, %v4602_v51  ;;  %v1596_v53 = vrot.slane %v1183_v63, %v4714_v49  ;;  %v4743_v63 = vsub.s32 %v1606_v46, %v4682_v52 }
 0x1d6   :  { %v3369_v60 = vpop.f32.mrb[84].mxu0  ;;  %v4099_v2 = vpop.eup %4098  ;;  %v1589_v55 = vrot.slane %v1181_v58, %v4717_v26 }
 0x1d7   :  { %4106 = vtanh.f32 %v3369_v60  ;;  %v690_v11 = vpop.f32.mrb[85].mxu0  ;;  %v1577_v10 = vsel %vm1576_vm1, %v1575_v59, %v1570_v7  ;;  %1318 = vadd.xlane.f32.xlu1 %v1117_v62  ;;  %1330 = vadd.xlane.f32.xlu0 %v1123_v56  ;;  %v4101_v60 = vpop.eup %4100  ;;  %v1116_v59 = vmul.f32 %v4097_v50, %v4602_v51  ;;  %v1122_v58 = vmul.f32 %v4099_v2, %v4602_v51 }
 0x1d8   :  { %4108 = vtanh.f32 %v4670_v8  ;;  %v1584_v45 = vsel %vm1583_vm2, %v1582_v9, %v1577_v10  ;;  %v1187_v47 = vpop.xlane.xlu0 %1186  ;;  %v4740_v62 = vsub.s32 %v1599_v0, %v4682_v52  ;;  %v4751_v50 = vsub.s32 %v1620_v6, %v4682_v52 }
 0x1d9   :  { %4110 = vtanh.f32 %v690_v11  ;;  %v1191_v54 = vpop.xlane.xlu1 %1190  ;;  %v1591_v8 = vsel %vm1590_vm3, %v1589_v55, %v1584_v45  ;;  %v3372_v41 = vpop.f32.mrb[86].mxu0  ;;  %v4748_v45 = vsub.s32 %v1613_v19, %v4682_v52  ;;  %v1119_v10 = vmul.f32 %v4101_v60, %v4602_v51 }
 0x1da   :  { %v4103_v56 = vpop.eup %4102  ;;  %v700_v7 = vpop.f32.mrb[87].mxu0  ;;  %v1598_v9 = vsel %vm1597_vm4, %v1596_v53, %v1591_v8  ;;  %4112 = vtanh.f32 %v4674_v3  ;;  %v1627_v55 = vadd.s32 4294967216, %v4676_v20  ;;  %v1610_v19 = vrot.slane %v1187_v47, %v4743_v63 }
 0x1db   :  { %1316 = vadd.xlane.f32.xlu1 %v1116_v59  ;;  %1328 = vadd.xlane.f32.xlu0 %v1122_v58  ;;  %4114 = vtanh.f32 %v3372_v41  ;;  %v1124_v3 = vmul.f32 %v4103_v56, %v4602_v51  ;;  %v4105_v53 = vpop.eup %4104  ;;  %v1634_v41 = vadd.s32 4294967208, %v4676_v20  ;;  %v1624_v58 = vrot.slane %v1191_v54, %v4751_v50 }
 0x1dc   :  { %v1185_v0 = vpop.xlane.xlu0 %1184  ;;  %4116 = vtanh.f32 %v4685_v57  ;;  %v1118_v57 = vmul.f32 %v4105_v53, %v4602_v51 }
 0x1dd   :  { %v1189_v2 = vpop.xlane.xlu1 %1188  ;;  %v1603_v46 = vrot.slane %v1185_v0, %v4740_v62  ;;  %v3375_v11 = vpop.f32.mrb[88].mxu0  ;;  %4118 = vtanh.f32 %v700_v7 }
 0x1de   :  { %v710_v6 = vpop.f32.mrb[89].mxu0  ;;  %v1617_v59 = vrot.slane %v1189_v2, %v4748_v45  ;;  %v4768_v2 = vsub.s32 %v1627_v55, %v4682_v52  ;;  %4120 = vtanh.f32 %v4700_v5  ;;  %v1641_v5 = vadd.s32 4294967200, %v4676_v20 }
 0x1df   :  { %v1605_v8 = vsel %vm1604_vm5, %v1603_v46, %v1598_v9  ;;  %1322 = vadd.xlane.f32.xlu1 %v1119_v10  ;;  %1332 = vadd.xlane.f32.xlu0 %v1124_v3  ;;  %v4771_v10 = vsub.s32 %v1634_v41, %v4682_v52  ;;  %4122 = vtanh.f32 %v3375_v11 }
 0x1e0   :  { %v1612_v56 = vsel %vm1611_vm6, %v1610_v19, %v1605_v8  ;;  %v4779_v19 = vld [vmem:[%s5306_s3] ss:$0 sm:$0xff]  ;;  %4124 = vtanh.f32 %v4711_v48  ;;  %s4444_s3 = smov [#allocation9]  }
 0x1e1   :  { %v4107_v60 = vpop.eup %4106  ;;  %v1195_v47 = vpop.xlane.xlu1 %1194  ;;  %v1619_v40 = vsel %vm1618_vm7, %v1617_v59, %v1612_v56  ;;  %4126 = vtanh.f32 %v710_v6  ;;  %s2914_s7 = sshll.u32 %s4444_s3, 4  ;;  %s2915_s7 = int_to_ptr.vmem [resolvable:$true] %s2914_s7 }
 0x1e2   :  { %v4109_v0 = vpop.eup %4108  ;;  %v3378_v36 = vpop.f32.mrb[90].mxu0  ;;  %v1129_v9 = vmul.f32 %v4107_v60, %v4602_v51  ;;  %v1626_v7 = vsel %vm1625_vm8, %v1624_v58, %v1619_v40  ;;  %v1638_v11 = vrot.slane %v1195_v47, %v4771_v10  ;;  %v1648_v60 = vadd.s32 4294967192, %v4676_v20  ;;  %s4383_s8 = scalar_lea.vmem %s2915_s7, 128  ;;  %p4388_p11 = scmp.lt.s32.totalorder %s2915_s7, %s2915_s7 }
 0x1e3   :  { %v4111_v46 = vpop.eup %4110  ;;  %v720_v54 = vpop.f32.mrb[91].mxu0  ;;  %1320 = vadd.xlane.f32.xlu1 %v1118_v57  ;;  %v1121_v41 = vmul.f32 %v4779_v19, %v4109_v0  ;;  %v4792_v47 = vsub.s32 %v1641_v5, %v4682_v52  ;;  %4128 = vtanh.f32 %v3378_v36  ;;  %p4384_p10 = scmp.ne.s32.totalorder %s2915_s7, %s4383_s8  ;;  %p4389_p12 = scmp.lt.s32.totalorder %s4383_s8, %s4383_s8 }
 0x1e4   :  { %1342 = vadd.xlane.f32.xlu0 %v1129_v9  ;;  %v4113_v53 = vpop.eup %4112  ;;  %v1128_v40 = vmul.f32 %v4779_v19, %v4111_v46  ;;  %v4795_v48 = vsub.s32 %v1648_v60, %v4682_v52 }
 0x1e5   :  { %v1193_v3 = vpop.xlane.xlu1 %1192  ;;  %v3381_v55 = vpop.f32.mrb[92].mxu0  ;;  %v1120_v46 = vmul.f32 %v4779_v19, %v4113_v53  ;;  %p4390_p13 = por %p4389_p12, %p4388_p11 }
 0x1e6   :  { %v1631_v51 = vrot.slane %v1193_v3, %v4768_v2  ;;  %v4115_v8 = vpop.eup %4114  ;;  %v730_v59 = vpop.f32.mrb[93].mxu0  ;;  %4130 = vtanh.f32 %v3381_v55 }
 0x1e7   :  { %1326 = vadd.xlane.f32.xlu1 %v1121_v41  ;;  %v4117_v57 = vpop.eup %4116  ;;  %v1131_v3 = vmul.f32 %v4779_v19, %v4115_v8  ;;  %v1655_v8 = vadd.s32 4294967184, %v4676_v20  ;;  %4132 = vtanh.f32 %v720_v54  ;;  %p4391_p0 = pnand %p4390_p13, %p4384_p10 }
 0x1e8   :  { %v1633_v58 = vsel %vm1632_vm9, %v1631_v51, %v1626_v7  ;;  %1340 = vadd.xlane.f32.xlu0 %v1128_v40  ;;  %v4119_v32 = vpop.eup %4118  ;;  %v1125_v40 = vmul.f32 %v4779_v19, %v4117_v57 }
 0x1e9   :  { %v1199_v56 = vpop.xlane.xlu1 %1198  ;;  %v1640_v0 = vsel %vm1639_vm10, %v1638_v11, %v1633_v58  ;;  %v3384_v9 = vpop.f32.mrb[94].mxu0  ;;  %v1130_v5 = vmul.f32 %v4779_v19, %v4119_v32  ;;  %v1662_v58 = vadd.s32 4294967176, %v4676_v20  ;;  %v4810_v27 = vsub.s32 %v1655_v8, %v4682_v52 }
 0x1ea   :  { %v740_v7 = vpop.f32.mrb[95].mxu0  ;;  %v4121_v51 = vpop.eup %4120  ;;  %v1652_v60 = vrot.slane %v1199_v56, %v4795_v48 }
 0x1eb   :  { %1324 = vadd.xlane.f32.xlu1 %v1120_v46  ;;  %v4123_v11 = vpop.eup %4122  ;;  %4134 = vtanh.f32 %v740_v7  ;;  %v1127_v31 = vmul.f32 %v4779_v19, %v4121_v51  ;;  %v4813_v54 = vsub.s32 %v1662_v58, %v4682_v52 }
 0x1ec   :  { %1346 = vadd.xlane.f32.xlu0 %v1131_v3  ;;  %v4125_v32 = vpop.eup %4124  ;;  %v1133_v56 = vmul.f32 %v4779_v19, %v4123_v11  ;;  %4136 = vtanh.f32 %v730_v59 }
 0x1ed   :  { %v1197_v6 = vpop.xlane.xlu1 %1196  ;;  %v3387_v41 = vpop.f32.mrb[96].mxu0  ;;  %v1126_v8 = vmul.f32 %v4779_v19, %v4125_v32 }
 0x1ee   :  { %v1645_v53 = vrot.slane %v1197_v6, %v4792_v47  ;;  %v750_v36 = vpop.f32.mrb[97].mxu0  ;;  %v4127_v20 = vpop.eup %4126  ;;  %4138 = vtanh.f32 %v3387_v41 }
 0x1ef   :  { %1334 = vadd.xlane.f32.xlu1 %v1125_v40  ;;  %v4129_v40 = vpop.eup %4128  ;;  %v1132_v11 = vmul.f32 %v4779_v19, %v4127_v20  ;;  %4140 = vtanh.f32 %v3384_v9 }
 0x1f0   :  { %v1647_v55 = vsel %vm1646_vm11, %v1645_v53, %v1640_v0  ;;  %1344 = vadd.xlane.f32.xlu0 %v1130_v5  ;;  %v4804_v3 = vpop.xlane.xlu0 %1214  ;;  %v1135_v20 = vmul.f32 %v4779_v19, %v4129_v40 }
 0x1f1   :  { %v1203_v46 = vpop.xlane.xlu1 %1202  ;;  %v1654_v57 = vsel %vm1653_vm12, %v1652_v60, %v1647_v55  ;;  %v3390_v6 = vpop.f32.mrb[98].mxu0 }
 0x1f2   :  { %v760_v0 = vpop.f32.mrb[99].mxu0  ;;  %v4131_v60 = vpop.eup %4130  ;;  %v1666_v58 = vrot.slane %v1203_v46, %v4813_v54  ;;  %4142 = vtanh.f32 %v3390_v6 }
 0x1f3   :  { %1338 = vadd.xlane.f32.xlu1 %v1127_v31  ;;  %v1137_v22 = vmul.f32 %v4779_v19, %v4131_v60  ;;  %4144 = vtanh.f32 %v750_v36 }
 0x1f4   :  { %1350 = vadd.xlane.f32.xlu0 %v1133_v56  ;;  %v4815_v53 = vpop.xlane.xlu0 %1212 }
 0x1f5   :  { %v1201_v7 = vpop.xlane.xlu1 %1200  ;;  %v3393_v5 = vpop.f32.mrb[100].mxu0 }
 0x1f6   :  { %v1659_v51 = vrot.slane %v1201_v7, %v4810_v27  ;;  %v770_v59 = vpop.f32.mrb[101].mxu0  ;;  %v4133_v7 = vpop.eup %4132  ;;  %4146 = vtanh.f32 %v3393_v5 }
 0x1f7   :  { %1336 = vadd.xlane.f32.xlu1 %v1126_v8  ;;  %v4135_v46 = vpop.eup %4134  ;;  %4148 = vtanh.f32 %v760_v0 }
 0x1f8   :  { %v1661_v31 = vsel %vm1660_vm13, %v1659_v51, %v1654_v57  ;;  %1348 = vadd.xlane.f32.xlu0 %v1132_v11  ;;  %v4825_v56 = vpop.xlane.xlu0 %1222  ;;  %v4137_v6 = vpop.eup %4136  ;;  %v1138_v40 = vmul.f32 %v4779_v19, %v4135_v46  ;;  %4150 = vtanh.f32 %v770_v59 }
 0x1f9   :  { %v4823_v41 = vsel %vm1667_vm14, %v1666_v58, %v1661_v31  ;;  %v1207_v55 = vpop.xlane.xlu1 %1206  ;;  %v3396_v32 = vpop.f32.mrb[102].mxu0  ;;  %v1134_v58 = vmul.f32 %v4779_v19, %v4133_v7 }
 0x1fa   :  { %v780_v21 = vpop.f32.mrb[103].mxu0  ;;  %v1676_v51 = vrot.slane %v1207_v55, %v4698_v4  ;;  %v4139_v60 = vpop.eup %4138  ;;  %4152 = vtanh.f32 %v3396_v32 }
 0x1fb   :  { %1358 = vadd.xlane.f32.xlu1 %v1137_v22  ;;  %v4141_v55 = vpop.eup %4140  ;;  %v1141_v7 = vmul.f32 %v4779_v19, %v4139_v60 }
 0x1fc   :  { %1354 = vadd.xlane.f32.xlu0 %v1135_v20  ;;  %v4829_v57 = vpop.xlane.xlu0 %1220  ;;  %v4143_v46 = vpop.eup %4142 }
 0x1fd   :  { %v1205_v9 = vpop.xlane.xlu1 %1204  ;;  %v3399_v11 = vpop.f32.mrb[104].mxu0  ;;  %v1143_v42 = vmul.f32 %v4779_v19, %v4143_v46 }
 0x1fe   :  { %v1672_v8 = vrot.slane %v1205_v9, %v4692_v61  ;;  %v4835_v31 = vpop.f32.mrb[105].mxu0  ;;  %v1136_v9 = vmul.f32 %v4779_v19, %v4137_v6  ;;  %v4145_v59 = vpop.eup %4144 }
 0x1ff   :  { %1360 = vadd.xlane.f32.xlu1 %v1138_v40  ;;  %v1139_v40 = vmul.f32 %v4779_v19, %v4141_v55 }
 0x200   :  { %v1677_v22 = vsel %vm1569_vm0, %v1676_v51, %v1672_v8  ;;  %1352 = vadd.xlane.f32.xlu0 %v1134_v58  ;;  %v4838_v5 = vpop.xlane.xlu0 %1226  ;;  %v4147_v6 = vpop.eup %4146 }
 0x201   :  { %v1211_v36 = vpop.xlane.xlu1 %1210  ;;  %v4840_v20 = vpop.f32.mrb[106].mxu0 }
 0x202   :  { %v4844_v15 = vpop.f32.mrb[107].mxu0  ;;  %v1686_v60 = vrot.slane %v1211_v36, %v4709_v44  ;;  %v4149_v38 = vpop.eup %4148 }
 0x203   :  { %1366 = vadd.xlane.f32.xlu1 %v1141_v7  ;;  %v1696_v7 = vrot.slane %v4804_v3, %v4714_v49 }
 0x204   :  { %1356 = vadd.xlane.f32.xlu0 %v1136_v9  ;;  %v4846_v51 = vpop.xlane.xlu0 %1224  ;;  %v1691_v9 = vrot.slane %v4815_v53, %v4717_v26  ;;  %v1145_v53 = vmul.f32 %v4779_v19, %v4147_v6 }
 0x205   :  { %v1209_v0 = vpop.xlane.xlu1 %1208  ;;  %v3405_v58 = vpop.f32.mrb[108].mxu0 }
 0x206   :  { %v1681_v8 = vrot.slane %v1209_v0, %v4705_v1  ;;  %4154 = vtanh.f32 %v3405_v58  ;;  %v810_v43 = vpop.f32.mrb[109].mxu0  ;;  %v1140_v58 = vmul.f32 %v4779_v19, %v4145_v59 }
 0x207   :  { %4156 = vtanh.f32 %v780_v21  ;;  %1370 = vadd.xlane.f32.xlu1 %v1143_v42 }
 0x208   :  { %v1682_v32 = vsel %vm1576_vm1, %v1681_v8, %v1677_v22  ;;  %1362 = vadd.xlane.f32.xlu0 %v1139_v40  ;;  %4158 = vtanh.f32 %v810_v43  ;;  %v1231_v0 = vpop.xlane.xlu0 %1230  ;;  %v4151_v22 = vpop.eup %4150 }
 0x209   :  { %v1687_v55 = vsel %vm1583_vm2, %v1686_v60, %v1682_v32  ;;  %v1219_v46 = vpop.xlane.xlu1 %1218  ;;  %v4858_v36 = vpop.f32.mrb[110].mxu0  ;;  %4160 = vtanh.f32 %v3399_v11  ;;  %v1142_v32 = vmul.f32 %v4779_v19, %v4149_v38  ;;  %v1144_v59 = vmul.f32 %v4779_v19, %v4151_v22 }
 0x20a   :  { %v1692_v21 = vsel %vm1590_vm3, %v1691_v9, %v1687_v55  ;;  %v4863_v8 = vpop.f32.mrb[111].mxu0  ;;  %v4153_v6 = vpop.eup %4152  ;;  %v1706_v9 = vrot.slane %v1219_v46, %v4743_v63  ;;  %v1711_v11 = vrot.slane %v4829_v57, %v4748_v45 }
 0x20b   :  { %v1697_v42 = vsel %vm1597_vm4, %v1696_v7, %v1692_v21  ;;  %1374 = vadd.xlane.f32.xlu1 %v1145_v53  ;;  %v1716_v53 = vrot.slane %v4825_v56, %v4751_v50  ;;  %v1726_v56 = vrot.slane %v4838_v5, %v4771_v10 }
 0x20c   :  { %1364 = vadd.xlane.f32.xlu0 %v1140_v58  ;;  %v1229_v3 = vpop.xlane.xlu0 %1228 }
 0x20d   :  { %v1217_v43 = vpop.xlane.xlu1 %1216  ;;  %v3411_v60 = vpop.f32.mrb[112].mxu0 }
 0x20e   :  { %v1701_v40 = vrot.slane %v1217_v43, %v4740_v62  ;;  %4162 = vtanh.f32 %v3411_v60  ;;  %v4870_v55 = vpop.f32.mrb[113].mxu0  ;;  %v1721_v43 = vrot.slane %v4846_v51, %v4768_v2  ;;  %v1731_v51 = vrot.slane %v1229_v3, %v4792_v47 }
 0x20f   :  { %1372 = vadd.xlane.f32.xlu1 %v1144_v59  ;;  %4164 = vtanh.f32 %v4835_v31 }
 0x210   :  { %v1702_v7 = vsel %vm1604_vm5, %v1701_v40, %v1697_v42  ;;  %1368 = vadd.xlane.f32.xlu0 %v1142_v32  ;;  %v4155_v58 = vpop.eup %4154  ;;  %v1235_v21 = vpop.xlane.xlu0 %1234  ;;  %v1147_v42 = vmul.f32 %v4779_v19, %v4153_v6  ;;  %v1736_v6 = vrot.slane %v1231_v0, %v4795_v48 }
 0x211   :  { %v1707_v38 = vsel %vm1611_vm6, %v1706_v9, %v1702_v7  ;;  %v1239_v46 = vpop.xlane.xlu1 %1238  ;;  %v4157_v22 = vpop.eup %4156  ;;  %v1153_v40 = vmul.f32 %v4779_v19, %v4155_v58  ;;  %v1746_v3 = vrot.slane %v1235_v21, %v4813_v54 }
 0x212   :  { %v1712_v57 = vsel %vm1618_vm7, %v1711_v11, %v1707_v38  ;;  %v3414_v60 = vpop.f32.mrb[114].mxu0  ;;  %v4159_v32 = vpop.eup %4158  ;;  %v1755_v21 = vrot.slane %v1239_v46, %v4698_v4 }
 0x213   :  { %v1717_v31 = vsel %vm1625_vm8, %v1716_v53, %v1712_v57  ;;  %4166 = vtanh.f32 %v3414_v60  ;;  %v840_v59 = vpop.f32.mrb[115].mxu0  ;;  %1378 = vadd.xlane.f32.xlu1 %v1147_v42  ;;  %v4161_v5 = vpop.eup %4160 }
 0x214   :  { %4168 = vtanh.f32 %v4840_v20  ;;  %v1722_v9 = vsel %vm1632_vm9, %v1721_v43, %v1717_v31  ;;  %1390 = vadd.xlane.f32.xlu0 %v1153_v40  ;;  %v1233_v7 = vpop.xlane.xlu0 %1232  ;;  %v1146_v20 = vmul.f32 %v4779_v19, %v4157_v22  ;;  %v1152_v43 = vmul.f32 %v4779_v19, %v4159_v32 }
 0x215   :  { %v1727_v11 = vsel %vm1639_vm10, %v1726_v56, %v1722_v9  ;;  %4170 = vtanh.f32 %v840_v59  ;;  %v1243_v58 = vpop.xlane.xlu1 %1242  ;;  %v1741_v38 = vrot.slane %v1233_v7, %v4810_v27  ;;  %v3417_v57 = vpop.f32.mrb[116].mxu0  ;;  %v1149_v32 = vmul.f32 %v4779_v19, %v4161_v5 }
 0x216   :  { %v1732_v53 = vsel %vm1646_vm11, %v1731_v51, %v1727_v11  ;;  %4172 = vtanh.f32 %v3417_v57  ;;  %v850_v0 = vpop.f32.mrb[117].mxu0 }
 0x217   :  { %v1737_v60 = vsel %vm1653_vm12, %v1736_v6, %v1732_v53  ;;  %1376 = vadd.xlane.f32.xlu1 %v1146_v20  ;;  %4174 = vtanh.f32 %v4844_v15 }
 0x218   :  { %v1742_v42 = vsel %vm1660_vm13, %v1741_v38, %v1737_v60  ;;  %1388 = vadd.xlane.f32.xlu0 %v1152_v43  ;;  %v4163_v40 = vpop.eup %4162  ;;  %v1237_v22 = vpop.xlane.xlu0 %1236  ;;  %4176 = vtanh.f32 %v4863_v8  ;;  %v1765_v60 = vrot.slane %v1243_v58, %v4709_v44 }
 0x219   :  { %v1747_v56 = vsel %vm1667_vm14, %v1746_v3, %v1742_v42  ;;  %v1245_v31 = vpop.xlane.xlu1 %1244  ;;  %v1751_v9 = vrot.slane %v1237_v22, %v4692_v61  ;;  %v1157_v51 = vmul.f32 %v4779_v19, %v4163_v40  ;;  %v3420_v6 = vpop.f32.mrb[118].mxu0  ;;  %4178 = vtanh.f32 %v850_v0 }
 0x21a   :  { %v4905_v59 = vsel %vm5312_vm15, %v1747_v56, %v4823_v41  ;;  %v4165_v11 = vpop.eup %4164  ;;  %v860_v7 = vpop.f32.mrb[119].mxu0  ;;  %4180 = vtanh.f32 %v3420_v6  ;;  %v1770_v42 = vrot.slane %v1245_v31, %v4717_v26  ;;  %vm5313_vm15 = vcmask 1042434  }
 0x21b   :  { %v1756_v15 = vsel %vm1569_vm0, %v1755_v21, %v1751_v9  ;;  %1382 = vadd.xlane.f32.xlu1 %v1149_v32  ;;  %v1148_v20 = vmul.f32 %v4779_v19, %v4165_v11  ;;  %4182 = vtanh.f32 %v4870_v55 }
 0x21c   :  { %1398 = vadd.xlane.f32.xlu0 %v1157_v51  ;;  %v1241_v46 = vpop.xlane.xlu0 %1240  ;;  %4184 = vtanh.f32 %v4858_v36 }
 0x21d   :  { %v4167_v5 = vpop.eup %4166  ;;  %v1251_v53 = vpop.xlane.xlu1 %1250  ;;  %v1760_v41 = vrot.slane %v1241_v46, %v4705_v1  ;;  %4186 = vtanh.f32 %v860_v7 }
 0x21e   :  { %v4169_v38 = vpop.eup %4168  ;;  %v1159_v43 = vmul.f32 %v4779_v19, %v4167_v5  ;;  %v3423_v57 = vpop.f32.mrb[120].mxu0 }
 0x21f   :  { %v4171_v3 = vpop.eup %4170  ;;  %v870_v8 = vpop.f32.mrb[121].mxu0  ;;  %v1761_v40 = vsel %vm1576_vm1, %v1760_v41, %v1756_v15  ;;  %1380 = vadd.xlane.f32.xlu1 %v1148_v20  ;;  %v1151_v58 = vmul.f32 %v4779_v19, %v4169_v38  ;;  %4188 = vtanh.f32 %v3423_v57 }
 0x220   :  { %1402 = vadd.xlane.f32.xlu0 %v1159_v43  ;;  %v4173_v0 = vpop.eup %4172  ;;  %v1766_v56 = vsel %vm1583_vm2, %v1765_v60, %v1761_v40  ;;  %v1247_v22 = vpop.xlane.xlu0 %1246  ;;  %v1158_v51 = vmul.f32 %v4779_v19, %v4171_v3  ;;  %v1785_v60 = vrot.slane %v1251_v53, %v4743_v63 }
 0x221   :  { %v1255_v32 = vpop.xlane.xlu1 %1254  ;;  %v1771_v21 = vsel %vm1590_vm3, %v1770_v42, %v1766_v56  ;;  %v1775_v9 = vrot.slane %v1247_v22, %v4714_v49  ;;  %v3426_v31 = vpop.f32.mrb[122].mxu0  ;;  %v1161_v55 = vmul.f32 %v4779_v19, %v4173_v0 }
 0x222   :  { %v4175_v6 = vpop.eup %4174  ;;  %v880_v11 = vpop.f32.mrb[123].mxu0  ;;  %4190 = vtanh.f32 %v3426_v31  ;;  %v1795_v0 = vrot.slane %v1255_v32, %v4751_v50 }
 0x223   :  { %v1776_v15 = vsel %vm1597_vm4, %v1775_v9, %v1771_v21  ;;  %1386 = vadd.xlane.f32.xlu1 %v1151_v58  ;;  %v4177_v41 = vpop.eup %4176  ;;  %v1150_v38 = vmul.f32 %v4779_v19, %v4175_v6 }
 0x224   :  { %1400 = vadd.xlane.f32.xlu0 %v1158_v51  ;;  %v1249_v5 = vpop.xlane.xlu0 %1248  ;;  %v4179_v3 = vpop.eup %4178  ;;  %v1154_v53 = vmul.f32 %v4779_v19, %v4177_v41 }
 0x225   :  { %v1253_v46 = vpop.xlane.xlu1 %1252  ;;  %v1780_v20 = vrot.slane %v1249_v5, %v4740_v62  ;;  %v3429_v43 = vpop.f32.mrb[124].mxu0  ;;  %v1160_v9 = vmul.f32 %v4779_v19, %v4179_v3 }
 0x226   :  { %v890_v36 = vpop.f32.mrb[125].mxu0  ;;  %v1790_v40 = vrot.slane %v1253_v46, %v4748_v45  ;;  %v4181_v7 = vpop.eup %4180 }
 0x227   :  { %v1781_v42 = vsel %vm1604_vm5, %v1780_v20, %v1776_v15  ;;  %1384 = vadd.xlane.f32.xlu1 %v1150_v38  ;;  %v4183_v51 = vpop.eup %4182  ;;  %4192 = vtanh.f32 %v890_v36  ;;  %v1163_v32 = vmul.f32 %v4779_v19, %v4181_v7 }
 0x228   :  { %1406 = vadd.xlane.f32.xlu0 %v1161_v55  ;;  %v1786_v56 = vsel %vm1611_vm6, %v1785_v60, %v1781_v42  ;;  %v4933_v21 = vpop.xlane.xlu0 %1270  ;;  %4194 = vtanh.f32 %v870_v8  ;;  %v4185_v5 = vpop.eup %4184  ;;  %v1156_v41 = vmul.f32 %v4779_v19, %v4183_v51 }
 0x229   :  { %v1259_v22 = vpop.xlane.xlu1 %1258  ;;  %v1791_v57 = vsel %vm1618_vm7, %v1790_v40, %v1786_v56  ;;  %v3432_v58 = vpop.f32.mrb[126].mxu0  ;;  %4196 = vtanh.f32 %v880_v11  ;;  %v1155_v7 = vmul.f32 %v4779_v19, %v4185_v5 }
 0x22a   :  { %v1796_v31 = vsel %vm1625_vm8, %v1795_v0, %v1791_v57  ;;  %v900_v6 = vpop.f32.mrb[127].mxu0  ;;  %v4187_v20 = vpop.eup %4186  ;;  %v1805_v38 = vrot.slane %v1259_v22, %v4771_v10  ;;  %4198 = vtanh.f32 %v3432_v58 }
 0x22b   :  { %1392 = vadd.xlane.f32.xlu1 %v1154_v53  ;;  %v4189_v3 = vpop.eup %4188  ;;  %v1162_v0 = vmul.f32 %v4779_v19, %v4187_v20  ;;  %4200 = vtanh.f32 %v3429_v43 }
 0x22c   :  { %1404 = vadd.xlane.f32.xlu0 %v1160_v9  ;;  %v4940_v55 = vpop.xlane.xlu0 %1274  ;;  %v4191_v36 = vpop.eup %4190  ;;  %v1165_v11 = vmul.f32 %v4779_v19, %v4189_v3  ;;  %4202 = vtanh.f32 %v900_v6 }
 0x22d   :  { %v1257_v15 = vpop.xlane.xlu1 %1256  ;;  %v1167_v56 = vmul.f32 %v4779_v19, %v4191_v36 }
 0x22e   :  { %v1800_v46 = vrot.slane %v1257_v15, %v4768_v2 }
 0x22f   :  { %1396 = vadd.xlane.f32.xlu1 %v1156_v41 }
 0x230   :  { %v1801_v60 = vsel %vm1632_vm9, %v1800_v46, %v1796_v31  ;;  %1410 = vadd.xlane.f32.xlu0 %v1163_v32  ;;  %v1273_v42 = vpop.xlane.xlu0 %1272 }
 0x231   :  { %v1263_v8 = vpop.xlane.xlu1 %1262  ;;  %v1806_v40 = vsel %vm1639_vm10, %v1805_v38, %v1801_v60  ;;  %v4193_v22 = vpop.eup %4192 }
 0x232   :  { %v4195_v58 = vpop.eup %4194  ;;  %v1815_v51 = vrot.slane %v1263_v8, %v4795_v48  ;;  %v1168_v43 = vmul.f32 %v4779_v19, %v4193_v22 }
 0x233   :  { %1394 = vadd.xlane.f32.xlu1 %v1155_v7  ;;  %v4197_v31 = vpop.eup %4196  ;;  %v1164_v20 = vmul.f32 %v4779_v19, %v4195_v58 }
 0x234   :  { %1408 = vadd.xlane.f32.xlu0 %v1162_v0  ;;  %v1283_v53 = vpop.xlane.xlu0 %1282  ;;  %v4199_v15 = vpop.eup %4198  ;;  %v1166_v38 = vmul.f32 %v4779_v19, %v4197_v31  ;;  %v1839_v31 = vrot.slane %v1273_v42, %v4705_v1 }
 0x235   :  { %v1261_v57 = vpop.xlane.xlu1 %1260  ;;  %v1171_v6 = vmul.f32 %v4779_v19, %v4199_v15  ;;  %v4201_v3 = vpop.eup %4200 }
 0x236   :  { %v1810_v9 = vrot.slane %v1261_v57, %v4792_v47  ;;  %v1169_v0 = vmul.f32 %v4779_v19, %v4201_v3 }
 0x237   :  { %1418 = vadd.xlane.f32.xlu1 %v1167_v56 }
 0x238   :  { %v1811_v32 = vsel %vm1646_vm11, %v1810_v9, %v1806_v40  ;;  %1414 = vadd.xlane.f32.xlu0 %v1165_v11  ;;  %v1281_v46 = vpop.xlane.xlu0 %1280  ;;  %v4203_v11 = vpop.eup %4202  ;;  %v1834_v9 = vrot.slane %v4933_v21, %v4698_v4 }
 0x239   :  { %v1267_v5 = vpop.xlane.xlu1 %1266  ;;  %v1816_v41 = vsel %vm1653_vm12, %v1815_v51, %v1811_v32  ;;  %v1844_v32 = vrot.slane %v4940_v55, %v4709_v44  ;;  %v1170_v15 = vmul.f32 %v4779_v19, %v4203_v11  ;;  %v1859_v55 = vrot.slane %v1281_v46, %v4740_v62 }
 0x23a   :  { %v1825_v40 = vrot.slane %v1267_v5, %v4813_v54 }
 0x23b   :  { %1420 = vadd.xlane.f32.xlu1 %v1168_v43 }
 0x23c   :  { %1412 = vadd.xlane.f32.xlu0 %v1164_v20  ;;  %v1287_v36 = vpop.xlane.xlu0 %1286 }
 0x23d   :  { %v1265_v60 = vpop.xlane.xlu1 %1264  ;;  %v1874_v11 = vrot.slane %v1287_v36, %v4751_v50 }
 0x23e   :  { %v1820_v8 = vrot.slane %v1265_v60, %v4810_v27  ;;  %v1864_v60 = vrot.slane %v1283_v53, %v4743_v63 }
 0x23f   :  { %1426 = vadd.xlane.f32.xlu1 %v1171_v6 }
 0x240   :  { %v1821_v7 = vsel %vm1660_vm13, %v1820_v8, %v1816_v41  ;;  %1416 = vadd.xlane.f32.xlu0 %v1166_v38  ;;  %v1285_v57 = vpop.xlane.xlu0 %1284 }
 0x241   :  { %v1826_v56 = vsel %vm1667_vm14, %v1825_v40, %v1821_v7  ;;  %v1269_v22 = vpop.xlane.xlu1 %1268  ;;  %v1869_v7 = vrot.slane %v1285_v57, %v4748_v45 }
 0x242   :  { %v2225_v58 = vsel %vm5313_vm15, %v1826_v56, %v4905_v59  ;;  %v1830_v51 = vrot.slane %v1269_v22, %v4692_v61  ;;  %vm5314_vm15 = vcmask 1043459  }
 0x244   :  { %v1835_v43 = vsel %vm1569_vm0, %v1834_v9, %v1830_v51  ;;  %1422 = vadd.xlane.f32.xlu0 %v1169_v0  ;;  %v1291_v20 = vpop.xlane.xlu0 %1290 }
 0x245   :  { %v1840_v5 = vsel %vm1576_vm1, %v1839_v31, %v1835_v43  ;;  %v1279_v41 = vpop.xlane.xlu1 %1278  ;;  %v1884_v9 = vrot.slane %v1291_v20, %v4771_v10 }
 0x246   :  { %v1845_v21 = vsel %vm1583_vm2, %v1844_v32, %v1840_v5  ;;  %v1854_v42 = vrot.slane %v1279_v41, %v4714_v49 }
 0x248   :  { %1424 = vadd.xlane.f32.xlu0 %v1170_v15  ;;  %v1289_v38 = vpop.xlane.xlu0 %1288 }
 0x249   :  { %v1277_v59 = vpop.xlane.xlu1 %1276  ;;  %v1879_v46 = vrot.slane %v1289_v38, %v4768_v2 }
 0x24a   :  { %v1849_v6 = vrot.slane %v1277_v59, %v4717_v26 }
 0x24c   :  { %v1850_v3 = vsel %vm1590_vm3, %v1849_v6, %v1845_v21  ;;  %v1295_v8 = vpop.xlane.xlu0 %1294 }
 0x24d   :  { %v1855_v19 = vsel %vm1597_vm4, %v1854_v42, %v1850_v3  ;;  %v1299_v40 = vpop.xlane.xlu1 %1298  ;;  %v1894_v43 = vrot.slane %v1295_v8, %v4795_v48 }
 0x24e   :  { %v1860_v0 = vsel %vm1604_vm5, %v1859_v55, %v1855_v19  ;;  %v1904_v59 = vrot.slane %v1299_v40, %v4813_v54 }
 0x24f   :  { %v1865_v56 = vsel %vm1611_vm6, %v1864_v60, %v1860_v0 }
 0x250   :  { %v1870_v22 = vsel %vm1618_vm7, %v1869_v7, %v1865_v56  ;;  %v1293_v51 = vpop.xlane.xlu0 %1292 }
 0x251   :  { %v1875_v53 = vsel %vm1625_vm8, %v1874_v11, %v1870_v22  ;;  %v1301_v31 = vpop.xlane.xlu1 %1300  ;;  %v1889_v57 = vrot.slane %v1293_v51, %v4792_v47 }
 0x252   :  { %v1880_v32 = vsel %vm1632_vm9, %v1879_v46, %v1875_v53  ;;  %v1909_v3 = vrot.slane %v1301_v31, %v4692_v61 }
 0x253   :  { %v1885_v36 = vsel %vm1639_vm10, %v1884_v9, %v1880_v32 }
 0x254   :  { %v1890_v15 = vsel %vm1646_vm11, %v1889_v57, %v1885_v36  ;;  %v1297_v41 = vpop.xlane.xlu0 %1296 }
 0x255   :  { %v1895_v5 = vsel %vm1653_vm12, %v1894_v43, %v1890_v15  ;;  %v1305_v21 = vpop.xlane.xlu1 %1304  ;;  %v1899_v20 = vrot.slane %v1297_v41, %v4810_v27 }
 0x256   :  { %v1918_v8 = vrot.slane %v1305_v21, %v4705_v1 }
 0x257   :  { %v1900_v38 = vsel %vm1660_vm13, %v1899_v20, %v1895_v5 }
 0x258   :  { %v1905_v6 = vsel %vm1667_vm14, %v1904_v59, %v1900_v38  ;;  %v1303_v42 = vpop.xlane.xlu0 %1302 }
 0x259   :  { %v1311_v55 = vpop.xlane.xlu1 %1310  ;;  %v2227_v60 = vsel %vm5314_vm15, %v1905_v6, %v2225_v58  ;;  %v1913_v19 = vrot.slane %v1303_v42, %v4698_v4  ;;  %vm5315_vm15 = vcmask 1044484  }
 0x25a   :  { %v1933_v58 = vrot.slane %v1311_v55, %v4714_v49 }
 0x25b   :  { %v1914_v7 = vsel %vm1569_vm0, %v1913_v19, %v1909_v3 }
 0x25c   :  { %v1307_v0 = vpop.xlane.xlu0 %1306  ;;  %v1919_v40 = vsel %vm1576_vm1, %v1918_v8, %v1914_v7 }
 0x25d   :  { %v1315_v11 = vpop.xlane.xlu1 %1314  ;;  %v1923_v56 = vrot.slane %v1307_v0, %v4709_v44 }
 0x25e   :  { %v1943_v32 = vrot.slane %v1315_v11, %v4743_v63 }
 0x25f   :  { %v1924_v22 = vsel %vm1583_vm2, %v1923_v56, %v1919_v40 }
 0x260   :  { %v1309_v46 = vpop.xlane.xlu0 %1308 }
 0x261   :  { %v1313_v9 = vpop.xlane.xlu1 %1312  ;;  %v1928_v53 = vrot.slane %v1309_v46, %v4717_v26 }
 0x262   :  { %v1938_v31 = vrot.slane %v1313_v9, %v4740_v62 }
 0x263   :  { %v1929_v51 = vsel %vm1590_vm3, %v1928_v53, %v1924_v22 }
 0x264   :  { %v1934_v57 = vsel %vm1597_vm4, %v1933_v58, %v1929_v51  ;;  %v1331_v36 = vpop.xlane.xlu0 %1330 }
 0x265   :  { %v1319_v43 = vpop.xlane.xlu1 %1318  ;;  %v1939_v15 = vsel %vm1604_vm5, %v1938_v31, %v1934_v57  ;;  %v1983_v31 = vrot.slane %v1331_v36, %v4813_v54 }
 0x266   :  { %v1944_v5 = vsel %vm1611_vm6, %v1943_v32, %v1939_v15  ;;  %v1953_v59 = vrot.slane %v1319_v43, %v4751_v50 }
 0x268   :  { %v1329_v21 = vpop.xlane.xlu0 %1328 }
 0x269   :  { %v1317_v41 = vpop.xlane.xlu1 %1316  ;;  %v1978_v58 = vrot.slane %v1329_v21, %v4810_v27 }
 0x26a   :  { %v1948_v20 = vrot.slane %v1317_v41, %v4748_v45 }
 0x26c   :  { %v1949_v38 = vsel %vm1618_vm7, %v1948_v20, %v1944_v5  ;;  %v1333_v42 = vpop.xlane.xlu0 %1332 }
 0x26d   :  { %v1323_v6 = vpop.xlane.xlu1 %1322  ;;  %v1954_v55 = vsel %vm1625_vm8, %v1953_v59, %v1949_v38  ;;  %v1988_v15 = vrot.slane %v1333_v42, %v4692_v61 }
 0x26e   :  { %v1963_v7 = vrot.slane %v1323_v6, %v4771_v10 }
 0x271   :  { %v1321_v3 = vpop.xlane.xlu1 %1320  ;;  %v1343_v19 = vpop.xlane.xlu0 %1342 }
 0x272   :  { %v1958_v8 = vrot.slane %v1321_v3, %v4768_v2 }
 0x274   :  { %v1959_v0 = vsel %vm1632_vm9, %v1958_v8, %v1954_v55 }
 0x275   :  { %v1327_v40 = vpop.xlane.xlu1 %1326  ;;  %v1341_v11 = vpop.xlane.xlu0 %1340  ;;  %v1964_v56 = vsel %vm1639_vm10, %v1963_v7, %v1959_v0  ;;  %v2012_v0 = vrot.slane %v1343_v19, %v4714_v49 }
 0x276   :  { %v1973_v53 = vrot.slane %v1327_v40, %v4795_v48  ;;  %v2007_v42 = vrot.slane %v1341_v11, %v4717_v26 }
 0x279   :  { %v1325_v22 = vpop.xlane.xlu1 %1324  ;;  %v1347_v46 = vpop.xlane.xlu0 %1346 }
 0x27a   :  { %v1968_v9 = vrot.slane %v1325_v22, %v4792_v47 }
 0x27c   :  { %v1969_v51 = vsel %vm1646_vm11, %v1968_v9, %v1964_v56 }
 0x27d   :  { %v1974_v32 = vsel %vm1653_vm12, %v1973_v53, %v1969_v51  ;;  %v1335_v57 = vpop.xlane.xlu1 %1334  ;;  %v1345_v43 = vpop.xlane.xlu0 %1344  ;;  %v2022_v53 = vrot.slane %v1347_v46, %v4743_v63 }
 0x27e   :  { %v1979_v5 = vsel %vm1660_vm13, %v1978_v58, %v1974_v32  ;;  %v1992_v41 = vrot.slane %v1335_v57, %v4698_v4 }
 0x27f   :  { %v1984_v20 = vsel %vm1667_vm14, %v1983_v31, %v1979_v5 }
 0x280   :  { %v1993_v59 = vsel %vm1569_vm0, %v1992_v41, %v1988_v15  ;;  %v2229_v21 = vsel %vm5315_vm15, %v1984_v20, %v2227_v60  ;;  %v2017_v60 = vrot.slane %v1345_v43, %v4740_v62  ;;  %vm2230_vm15 = vcmask 1045509  }
 0x281   :  { %v1339_v38 = vpop.xlane.xlu1 %1338  ;;  %v1351_v6 = vpop.xlane.xlu0 %1350 }
 0x282   :  { %v2002_v8 = vrot.slane %v1339_v38, %v4709_v44  ;;  %v2032_v31 = vrot.slane %v1351_v6, %v4751_v50 }
 0x285   :  { %v1337_v36 = vpop.xlane.xlu1 %1336  ;;  %v1349_v55 = vpop.xlane.xlu0 %1348 }
 0x286   :  { %v1997_v3 = vrot.slane %v1337_v36, %v4705_v1  ;;  %v2027_v11 = vrot.slane %v1349_v55, %v4748_v45 }
 0x288   :  { %v1998_v7 = vsel %vm1576_vm1, %v1997_v3, %v1993_v59 }
 0x289   :  { %v2003_v40 = vsel %vm1583_vm2, %v2002_v8, %v1998_v7  ;;  %v1355_v56 = vpop.xlane.xlu0 %1354  ;;  %v1359_v22 = vpop.xlane.xlu1 %1358 }
 0x28a   :  { %v2008_v9 = vsel %vm1590_vm3, %v2007_v42, %v2003_v40  ;;  %v2042_v5 = vrot.slane %v1355_v56, %v4771_v10  ;;  %v2052_v36 = vrot.slane %v1359_v22, %v4795_v48 }
 0x28b   :  { %v2013_v58 = vsel %vm1597_vm4, %v2012_v0, %v2008_v9 }
 0x28c   :  { %v2018_v51 = vsel %vm1604_vm5, %v2017_v60, %v2013_v58 }
 0x28d   :  { %v2023_v19 = vsel %vm1611_vm6, %v2022_v53, %v2018_v51  ;;  %v1353_v32 = vpop.xlane.xlu0 %1352  ;;  %v1361_v57 = vpop.xlane.xlu1 %1360 }
 0x28e   :  { %v2028_v15 = vsel %vm1618_vm7, %v2027_v11, %v2023_v19  ;;  %v2037_v43 = vrot.slane %v1353_v32, %v4768_v2  ;;  %v2057_v55 = vrot.slane %v1361_v57, %v4810_v27 }
 0x28f   :  { %v2033_v46 = vsel %vm1625_vm8, %v2032_v31, %v2028_v15 }
 0x290   :  { %v2038_v41 = vsel %vm1632_vm9, %v2037_v43, %v2033_v46 }
 0x291   :  { %v2043_v20 = vsel %vm1639_vm10, %v2042_v5, %v2038_v41  ;;  %v1357_v59 = vpop.xlane.xlu0 %1356  ;;  %v1367_v38 = vpop.xlane.xlu1 %1366 }
 0x292   :  { %v2047_v6 = vrot.slane %v1357_v59, %v4792_v47 }
 0x294   :  { %v2048_v3 = vsel %vm1646_vm11, %v2047_v6, %v2043_v20 }
 0x295   :  { %v2053_v8 = vsel %vm1653_vm12, %v2052_v36, %v2048_v3  ;;  %v1363_v42 = vpop.xlane.xlu0 %1362  ;;  %v1371_v7 = vpop.xlane.xlu1 %1370 }
 0x296   :  { %v2058_v0 = vsel %vm1660_vm13, %v2057_v55, %v2053_v8  ;;  %v2062_v40 = vrot.slane %v1363_v42, %v4813_v54  ;;  %v2081_v3 = vrot.slane %v1371_v7, %v4709_v44 }
 0x298   :  { %v2063_v56 = vsel %vm1667_vm14, %v2062_v40, %v2058_v0 }
 0x299   :  { %v1365_v60 = vpop.xlane.xlu0 %1364  ;;  %v1375_v9 = vpop.xlane.xlu1 %1374  ;;  %v5065_v53 = vsel %vm2230_vm15, %v2063_v56, %v2229_v21  ;;  %v2071_v21 = vrot.slane %v1367_v38, %v4698_v4 }
 0x29a   :  { %v2067_v41 = vrot.slane %v1365_v60, %v4692_v61  ;;  %v2091_v39 = vrot.slane %v1375_v9, %v4714_v49 }
 0x29c   :  { %v2072_v36 = vsel %vm1569_vm0, %v2071_v21, %v2067_v41 }
 0x29d   :  { %v1369_v22 = vpop.xlane.xlu0 %1368  ;;  %v1373_v58 = vpop.xlane.xlu1 %1372 }
 0x29e   :  { %v2076_v20 = vrot.slane %v1369_v22, %v4705_v1  ;;  %v2086_v40 = vrot.slane %v1373_v58, %v4717_v26 }
 0x2a0   :  { %v2077_v55 = vsel %vm1576_vm1, %v2076_v20, %v2072_v36 }
 0x2a1   :  { %v1379_v51 = vpop.xlane.xlu1 %1378  ;;  %v5067_v11 = vpop.xlane.xlu0 %1390  ;;  %v2082_v0 = vsel %vm1583_vm2, %v2081_v3, %v2077_v55 }
 0x2a2   :  { %v2087_v56 = vsel %vm1590_vm3, %v2086_v40, %v2082_v0 }
 0x2a3   :  { %v2092_v21 = vsel %vm1597_vm4, %v2091_v39, %v2087_v56 }
 0x2a5   :  { %v1377_v31 = vpop.xlane.xlu1 %1376  ;;  %v5069_v19 = vpop.xlane.xlu0 %1388 }
 0x2a6   :  { %v2096_v60 = vrot.slane %v1377_v31, %v4740_v62 }
 0x2a8   :  { %v2097_v55 = vsel %vm1604_vm5, %v2096_v60, %v2092_v21 }
 0x2a9   :  { %v1383_v32 = vpop.xlane.xlu1 %1382  ;;  %v1399_v57 = vpop.xlane.xlu0 %1398 }
 0x2aa   :  { %v2150_v41 = vrot.slane %v1399_v57, %v4698_v4  ;;  %v2101_v4 = vrot.slane %v1379_v51, %v4743_v63  ;;  %v2111_v51 = vrot.slane %v1383_v32, %v4751_v50 }
 0x2ac   :  { %v2102_v57 = vsel %vm1611_vm6, %v2101_v4, %v2097_v55  ;;  %v2131_v55 = vrot.slane %v5067_v11, %v4795_v48 }
 0x2ad   :  { %v1381_v15 = vpop.xlane.xlu1 %1380  ;;  %v1403_v43 = vpop.xlane.xlu0 %1402 }
 0x2ae   :  { %v2160_v36 = vrot.slane %v1403_v43, %v4709_v44  ;;  %v2106_v31 = vrot.slane %v1381_v15, %v4748_v45 }
 0x2b0   :  { %v2107_v15 = vsel %vm1618_vm7, %v2106_v31, %v2102_v57 }
 0x2b1   :  { %v1387_v5 = vpop.xlane.xlu1 %1386  ;;  %v1401_v46 = vpop.xlane.xlu0 %1400  ;;  %v2112_v56 = vsel %vm1625_vm8, %v2111_v51, %v2107_v15 }
 0x2b2   :  { %v2155_v7 = vrot.slane %v1401_v46, %v4705_v1 }
 0x2b5   :  { %v1385_v59 = vpop.xlane.xlu1 %1384  ;;  %v1407_v6 = vpop.xlane.xlu0 %1406 }
 0x2b6   :  { %v2170_v1 = vrot.slane %v1407_v6, %v4714_v49 }
 0x2b9   :  { %v5077_v8 = vpop.xlane.xlu1 %1392  ;;  %v1405_v42 = vpop.xlane.xlu0 %1404 }
 0x2ba   :  { %v2165_v3 = vrot.slane %v1405_v42, %v4717_v26  ;;  %v2116_v26 = vrot.slane %v1385_v59, %v4768_v2 }
 0x2bc   :  { %v2117_v6 = vsel %vm1632_vm9, %v2116_v26, %v2112_v56  ;;  %v5323_v56 = vpack.c.bf16 %v4531_v18, %v4529_v17 }
 0x2bd   :  { %v1397_v38 = vpop.xlane.xlu1 %1396  ;;  %v1411_v22 = vpop.xlane.xlu0 %1410 }
 0x2be   :  { %v2146_v20 = vrot.slane %v1397_v38, %v4692_v61  ;;  %v2180_v60 = vrot.slane %v1411_v22, %v4743_v63 }
 0x2c0   :  { %v2151_v58 = vsel %vm1569_vm0, %v2150_v41, %v2146_v20  ;;  %vm2232_vm0 = vcmask 1046534  }
 0x2c1   :  { %v2156_v9 = vsel %vm1576_vm1, %v2155_v7, %v2151_v58  ;;  %v1409_v0 = vpop.xlane.xlu0 %1408  ;;  %v1395_v39 = vpop.xlane.xlu1 %1394  ;;  %v2126_v7 = vrot.slane %v5069_v19, %v4792_v47  ;;  %vm2234_vm1 = vcmask 1047559  }
 0x2c2   :  { %v2161_v61 = vsel %vm1583_vm2, %v2160_v36, %v2156_v9  ;;  %v2175_v43 = vrot.slane %v1409_v0, %v4740_v62  ;;  %v2121_v62 = vrot.slane %v1387_v5, %v4771_v10  ;;  %v2141_v0 = vrot.slane %v1395_v39, %v4813_v54 }
 0x2c3   :  { %v2166_v44 = vsel %vm1590_vm3, %v2165_v3, %v2161_v61  ;;  %vm4441_vm3 = vmmov 0  }
 0x2c4   :  { %v2171_v46 = vsel %vm1597_vm4, %v2170_v1, %v2166_v44  ;;  %v2122_v20 = vsel %vm1639_vm10, %v2121_v62, %v2117_v6  ;;  %v1428_v44 = vld [vmem:[#allocation5] sm:$0xff]  ;;  %vm5335_vm4 = vcmask 1041409  }
 0x2c5   :  { %v1415_v42 = vpop.xlane.xlu0 %1414  ;;  %v1419_v40 = vpop.xlane.xlu1 %1418  ;;  %v2176_v49 = vsel %vm1604_vm5, %v2175_v43, %v2171_v46  ;;  %v2127_v22 = vsel %vm1646_vm11, %v2126_v7, %v2122_v20  ;;  %vm1429_vm2 = vcmp.ne.s32.totalorder %v1428_v44, 0  ;;  %v5329_v7 = vld [vmem:[#allocation16_spill] sm:$0xff]  ;;  %v4222_v44 = vld [vmem:[#allocation2 + $0x108] sm:$0xff]  ;;  %vm5336_vm5 = vcmask 1042434  }
 0x2c6   :  { %v2181_v59 = vsel %vm1611_vm6, %v2180_v60, %v2176_v49  ;;  %v2190_v21 = vrot.slane %v1415_v42, %v4751_v50  ;;  %v2200_v5 = vrot.slane %v1419_v40, %v4771_v10  ;;  %v2136_v50 = vrot.slane %v5077_v8, %v4810_v27  ;;  %v4209_v42 = vld [vmem:[#allocation2] sm:$0xff] }
 0x2c7   :  { %v4440_v40 = vmov 0.0|0.0   ;;  %v5324_v49 = vpack.c.bf16 %v4539_v24, %v4537_v23  ;;  %v4442_v24 = vmov 0.0   ;;  %vm5337_vm6 = vcmask 1043459  }
 0x2c8   :  { %3745 = vmatprep.subr.bf16.mxu1 %v4440_v40  ;;  %3465 = vmatprep.mubr.msk.f32.mxu1 %vm4441_vm3, %v4442_v24 }
 0x2c9   :  { %v1413_v38 = vpop.xlane.xlu0 %1412  ;;  %v1421_v58 = vpop.xlane.xlu1 %1420 }
 0x2ca   :  { %v2185_v41 = vrot.slane %v1413_v38, %v4748_v45  ;;  %v2205_v3 = vrot.slane %v1421_v58, %v4792_v47  ;;  %v4211_v58 = vld [vmem:[#allocation2 + $0xb0] sm:$0xff] }
 0x2cc   :  { %v2186_v32 = vsel %vm1618_vm7, %v2185_v41, %v2181_v59 }
 0x2cd   :  { %v1417_v36 = vpop.xlane.xlu0 %1416  ;;  %v2191_v45 = vsel %vm1625_vm8, %v2190_v21, %v2186_v32  ;;  %v1427_v61 = vpop.xlane.xlu1 %1426  ;;  %v5328_v32 = vpack.c.bf16 %v4563_v37, %v4559_v35  ;;  %v5330_v21 = vld [vmem:[#allocation15_spill] sm:$0xff]  ;;  %v4213_v37 = vld [vmem:[#allocation2 + $0xc0] sm:$0xff] }
 0x2ce   :  { %v2195_v63 = vrot.slane %v1417_v36, %v4768_v2  ;;  %v2132_v2 = vsel %vm1653_vm12, %v2131_v55, %v2127_v22  ;;  %v2220_v43 = vrot.slane %v1427_v61, %v4813_v54  ;;  %v5321_v54 = vpack.c.bf16 %v4521_v13, %v4519_v12  ;;  %v4214_v55 = vld [vmem:[#allocation2 + $0xc8] sm:$0xff] }
 0x2cf   :  { %v2137_v11 = vsel %vm1660_vm13, %v2136_v50, %v2132_v2  ;;  %v5325_v12 = vpack.c.bf16 %v4545_v28, %v4541_v25  ;;  %v5326_v13 = vpack.c.bf16 %v4549_v30, %v4547_v29  ;;  %v4443_v28 = vmov 1966171168   ;;  %v4216_v50 = vld [vmem:[#allocation2 + $0xd8] sm:$0xff]  ;;  %v4218_v2 = vld [vmem:[#allocation2 + $0xe8] sm:$0xff] }
 0x2d0   :  { %v2196_v31 = vsel %vm1632_vm9, %v2195_v63, %v2191_v45  ;;  %v2142_v47 = vsel %vm1667_vm14, %v2141_v0, %v2137_v11  ;;  %v2251_v29 = vunpack.c.l.s4 %v4443_v28  ;;  %v5331_v36 = vpack.c.bf16 %v5329_v7, %v5330_v21  ;;  %v4212_v63 = vld [vmem:[#allocation2 + $0xb8] sm:$0xff]  ;;  %v5333_v45 = vld [vmem:[#allocation17_spill] sm:$0xff]  ;;  %v4245_v7 = vld [vmem:[#allocation2 + $0x1c0] sm:$0xff] }
 0x2d1   :  { %v2201_v19 = vsel %vm1639_vm10, %v2200_v5, %v2196_v31  ;;  %v1423_v9 = vpop.xlane.xlu0 %1422  ;;  %v2233_v15 = vsel %vm2232_vm0, %v2142_v47, %v5065_v53  ;;  %v5322_v53 = vpack.c.bf16 %v4527_v16, %v4523_v14  ;;  %v5327_v14 = vpack.c.bf16 %v4557_v34, %v4555_v33  ;;  %v5332_v5 = vld [vmem:[#allocation18_spill] sm:$0xff]  ;;  %v4238_v28 = vld [vmem:[#allocation2 + $0x188] sm:$0xff] }
 0x2d2   :  { %v2210_v10 = vrot.slane %v1423_v9, %v4795_v48  ;;  %v2206_v4 = vsel %vm1646_vm11, %v2205_v3, %v2201_v19  ;;  %v2252_v30 = vunpack.c.0.s8 %v2251_v29  ;;  %v3779_v22 = vpack.c.bf16 %v4212_v63, %v4211_v58  ;;  %v4215_v3 = vld [vmem:[#allocation2 + $0xd0] sm:$0xff]  ;;  %v4217_v9 = vld [vmem:[#allocation2 + $0xe0] sm:$0xff]  ;;  %v4246_v21 = vld [vmem:[#allocation2 + $0x1c8] sm:$0xff] }
 0x2d3   :  { %v5334_v35 = vpack.c.bf16 %v5332_v5, %v5333_v45  ;;  %v3782_v31 = vpack.c.bf16 %v4214_v55, %v4213_v37  ;;  %v3785_v19 = vpack.c.bf16 %v4216_v50, %v4215_v3  ;;  %v3788_v0 = vpack.c.bf16 %v4218_v2, %v4217_v9  ;;  %v4247_v58 = vld [vmem:[#allocation2 + $0x1d0] sm:$0xff]  ;;  %v4248_v63 = vld [vmem:[#allocation2 + $0x1d8] sm:$0xff]  ;;  %v4249_v5 = vld [vmem:[#allocation2 + $0x1e0] sm:$0xff] }
 0x2d4   :  { %v2211_v57 = vsel %vm1653_vm12, %v2210_v10, %v2206_v4  ;;  %v2255_v33 = vsub.s32 %v2252_v30, %v4682_v52  ;;  %v4219_v10 = vld [vmem:[#allocation2 + $0xf0] sm:$0xff]  ;;  %v4220_v4 = vld [vmem:[#allocation2 + $0xf8] sm:$0xff]  ;;  %v4250_v45 = vld [vmem:[#allocation2 + $0x1e8] sm:$0xff] }
 0x2d5   :  { %v1425_v1 = vpop.xlane.xlu0 %1424  ;;  %v3791_v61 = vpack.c.bf16 %v4220_v4, %v4219_v10  ;;  %v4251_v37 = vld [vmem:[#allocation2 + $0x1f0] sm:$0xff]  ;;  %v4252_v55 = vld [vmem:[#allocation2 + $0x1f8] sm:$0xff]  ;;  %v4253_v3 = vld [vmem:[#allocation2 + $0x200] sm:$0xff] }
 0x2d6   :  { %v2215_v8 = vrot.slane %v1425_v1, %v4810_v27  ;;  %v4210_v27 = vld [vmem:[#allocation2 + $0x8] sm:$0xff]  ;;  %v4221_v1 = vld [vmem:[#allocation2 + $0x100] sm:$0xff]  ;;  %v4255_v2 = vld [vmem:[#allocation2 + $0x210] sm:$0xff] }
 0x2d7   :  { %v3746_v51 = vpack.c.bf16 %v4210_v27, %v4209_v42  ;;  %v3794_v47 = vpack.c.bf16 %v4222_v44, %v4221_v1  ;;  %v4228_v42 = vld [vmem:[#allocation2 + $0x138] sm:$0xff]  ;;  %v4254_v50 = vld [vmem:[#allocation2 + $0x208] sm:$0xff]  ;;  %v4257_v4 = vld [vmem:[#allocation2 + $0x220] sm:$0xff] }
 0x2d8   :  { %v2216_v39 = vsel %vm1660_vm13, %v2215_v8, %v2211_v57  ;;  %v4223_v57 = vld [vmem:[#allocation2 + $0x110] sm:$0xff]  ;;  %v4260_v44 = vld [vmem:[#allocation2 + $0x238] sm:$0xff] }
 0x2d9   :  { %v2221_v48 = vsel %vm1667_vm14, %v2220_v43, %v2216_v39  ;;  %3747 = vmatpush3.bf16.msra.mxu1 %v3746_v51  ;;  %v4224_v43 = vld [vmem:[#allocation2 + $0x118] sm:$0xff]  ;;  %v4229_v51 = vld [vmem:[#allocation2 + $0x140] sm:$0xff]  ;;  %v4259_v1 = vld [vmem:[#allocation2 + $0x230] sm:$0xff] }
 0x2da   :  { %v2235_v26 = vsel %vm2234_vm1, %v2221_v48, %v2233_v15  ;;  %3748 = vmatprep.subr.bf16.mxu1 %v4440_v40  ;;  %v3797_v39 = vpack.c.bf16 %v4224_v43, %v4223_v57  ;;  %v4225_v48 = vld [vmem:[#allocation2 + $0x120] sm:$0xff]  ;;  %v4226_v15 = vld [vmem:[#allocation2 + $0x128] sm:$0xff] }
 0x2db   :  { %v2237_v46 = vsel %vm1429_vm2, -inf, %v2235_v26  ;;  %v3800_v26 = vpack.c.bf16 %v4226_v15, %v4225_v48  ;;  %v4262_v57 = vld [vmem:[#allocation2 + $0x248] sm:$0xff]  ;;  %v4264_v48 = vld [vmem:[#allocation2 + $0x258] sm:$0xff] }
 0x2dc   :  { %2238 = vmax.xlane.f32.xlu0 %v2237_v46 }
 0x2dd   :  { %3750 = vmatpush3.bf16.msra.mxu1 %v5321_v54  ;;  %v4230_v54 = vld [vmem:[#allocation2 + $0x148] sm:$0xff] }
 0x2de   :  { %3751 = vmatprep.subr.bf16.mxu1 %v4440_v40 }
 0x2e1   :  { %3753 = vmatpush3.bf16.msra.mxu1 %v5322_v53  ;;  %v3806_v53 = vpack.c.bf16 %v4230_v54, %v4229_v51  ;;  %v4268_v51 = vld [vmem:[#allocation2 + $0x278] sm:$0xff] }
 0x2e2   :  { %3754 = vmatprep.subr.bf16.mxu1 %v4440_v40 }
 0x2e5   :  { %3756 = vmatpush3.bf16.msra.mxu1 %v5323_v56  ;;  %v4231_v56 = vld [vmem:[#allocation2 + $0x150] sm:$0xff] }
 0x2e6   :  { %3757 = vmatprep.subr.bf16.mxu1 %v4440_v40 }
 0x2e9   :  { %3759 = vmatpush3.bf16.msra.mxu1 %v5324_v49  ;;  %v4232_v49 = vld [vmem:[#allocation2 + $0x158] sm:$0xff] }
 0x2ea   :  { %3760 = vmatprep.subr.bf16.mxu1 %v4440_v40 }
 0x2ed   :  { %3762 = vmatpush3.bf16.msra.mxu1 %v5325_v12  ;;  %v3809_v12 = vpack.c.bf16 %v4232_v49, %v4231_v56  ;;  %v4270_v56 = vld [vmem:[#allocation2 + $0x288] sm:$0xff] }
 0x2ee   :  { %3763 = vmatprep.subr.bf16.mxu1 %v4440_v40 }
 0x2f1   :  { %3765 = vmatpush3.bf16.msra.mxu1 %v5326_v13  ;;  %v4233_v13 = vld [vmem:[#allocation2 + $0x160] sm:$0xff] }
 0x2f2   :  { %3766 = vmatprep.subr.bf16.mxu1 %v4440_v40 }
 0x2f5   :  { %3768 = vmatpush3.bf16.msra.mxu1 %v5327_v14  ;;  %v4234_v14 = vld [vmem:[#allocation2 + $0x168] sm:$0xff] }
 0x2f6   :  { %3769 = vmatprep.subr.bf16.mxu1 %v4440_v40 }
 0x369   :  { %v2239_v16 = vpop.xlane.xlu0 %2238 }
 0x36a   :  { %v2240_v17 = vsub.f32 %v2237_v46, %v2239_v16  ;;  %v4227_v46 = vld [vmem:[#allocation2 + $0x130] sm:$0xff]  ;;  %v3812_v16 = vpack.c.bf16 %v4234_v14, %v4233_v13  ;;  %v4272_v13 = vld [vmem:[#allocation2 + $0x298] sm:$0xff] }
 0x36b   :  { %v3803_v27 = vpack.c.bf16 %v4228_v42, %v4227_v46  ;;  %v4266_v46 = vld [vmem:[#allocation2 + $0x268] sm:$0xff] }
 0x36c   :  { %v2241_v18 = vmul.f32 1.442695, %v2240_v17  ;;  %v4235_v17 = vld [vmem:[#allocation2 + $0x170] sm:$0xff] }
 0x36e   :  { %4204 = vpow2.f32 %v2241_v18  ;;  %v4236_v18 = vld [vmem:[#allocation2 + $0x178] sm:$0xff] }
 0x378   :  { %v4205_v23 = vpop.eup %4204 }
 0x379   :  { %2243 = vadd.xlane.f32.xlu1 %v4205_v23 }
 0x406   :  { %v2244_v25 = vpop.xlane.xlu1 %2243 }
 0x407   :  { %4206 = vrcp.f32 %v2244_v25  ;;  %v4237_v25 = vld [vmem:[#allocation2 + $0x180] sm:$0xff] }
 0x408   :  { %v3818_v29 = vpack.c.bf16 %v4238_v28, %v4237_v25  ;;  %v4276_v25 = vld [vmem:[#allocation2 + $0x2b8] sm:$0xff] }
 0x411   :  { %v4207_v34 = vpop.eup %4206 }
 0x412   :  { %v2246_v6 = vmul.f32 %v4207_v34, %v4205_v23  ;;  %v3815_v23 = vpack.c.bf16 %v4236_v18, %v4235_v17  ;;  %v4240_v34 = vld [vmem:[#allocation2 + $0x198] sm:$0xff]  ;;  %v4274_v17 = vld [vmem:[#allocation2 + $0x2a8] sm:$0xff] }
 0x414   :  { %v2256_v60 = vrot.slane %v2246_v6, %v2255_v33  ;;  %2247 = vst [vmem:[#allocation9] sm:$0xff] %v2246_v6  ;;  %v2249_v38 = vcombine.high %v2246_v6, %v2246_v6 }
 0x416   :  { %v5174_v62 = vrot.slane %v2256_v60, %v2255_v33  ;;  %v2263_v41 = vrot.slane %v2249_v38, %v2255_v33  ;;  %v2264_v11 = vcombine.high %v2256_v60, %v2256_v60  ;;  %v4241_v60 = vld [vmem:[#allocation2 + $0x1a0] sm:$0xff]  ;;  %v4242_v38 = vld [vmem:[#allocation2 + $0x1a8] sm:$0xff] }
 0x418   :  { %3466 = vmatmul.mubr.f32.vlgmr.msra.gmra.mrb[0].mxu1 %v5174_v62  ;;  %v5177_v59 = vrot.slane %v2263_v41, %v2255_v33  ;;  %v2265_v20 = vcombine.high %v2263_v41, %v2263_v41  ;;  %v5199_v8 = vrot.slane %v2264_v11, %v2255_v33  ;;  %v2294_v30 = vcombine.high %v5174_v62, %v5174_v62  ;;  %v4244_v62 = vld [vmem:[#allocation2 + $0x1b8] sm:$0xff] }
 0x419   :  { %3771 = vmatpush3.bf16.msra.mxu1 %v5328_v32  ;;  %3500 = vmatprep.mubr.msk.f32.mxu1 %vm4441_vm3, %v4442_v24  ;;  %v3824_v41 = vpack.c.bf16 %v4242_v38, %v4241_v60  ;;  %v4281_v38 = vld [vmem:[#allocation2 + $0x2e0] sm:$0xff] }
 0x41a   :  { %3772 = vmatprep.subr.bf16.mxu1 %v4440_v40  ;;  %v5185_v52 = vrot.slane %v2265_v20, %v2255_v33  ;;  %v4239_v33 = vld [vmem:[#allocation2 + $0x190] sm:$0xff]  ;;  %v2296_v9 = vcombine.high %v5199_v8, %v5199_v8 }
 0x41b   :  { %v3821_v6 = vpack.c.bf16 %v4240_v34, %v4239_v33  ;;  %v4243_v20 = vld [vmem:[#allocation2 + $0x1b0] sm:$0xff] }
 0x41c   :  { %v3827_v32 = vpack.c.bf16 %v4244_v62, %v4243_v20  ;;  %v4279_v34 = vld [vmem:[#allocation2 + $0x2d0] sm:$0xff] }
 0x41d   :  { %3774 = vmatpush3.bf16.msra.mxu1 %v5331_v36  ;;  %v3830_v36 = vpack.c.bf16 %v4246_v21, %v4245_v7  ;;  %v4283_v62 = vld [vmem:[#allocation2 + $0x2f0] sm:$0xff]  ;;  %v4285_v21 = vld [vmem:[#allocation2 + $0x300] sm:$0xff] }
 0x41e   :  { %3775 = vmatprep.subr.bf16.mxu1 %v4440_v40 }
 0x421   :  { %3777 = vmatpush3.bf16.msra.mxu1 %v5334_v35  ;;  %v3836_v35 = vpack.c.bf16 %v4250_v45, %v4249_v5  ;;  %v4289_v45 = vld [vmem:[#allocation2 + $0x320] sm:$0xff] }
 0x422   :  { %3778 = vmatprep.subr.bf16.mxu1 %v4440_v40 }
 0x425   :  { %3780 = vmatpush3.bf16.msra.mxu1 %v3779_v22  ;;  %v3833_v22 = vpack.c.bf16 %v4248_v63, %v4247_v58  ;;  %v4287_v63 = vld [vmem:[#allocation2 + $0x310] sm:$0xff] }
 0x426   :  { %3781 = vmatprep.subr.bf16.mxu1 %v4440_v40 }
 0x429   :  { %3783 = vmatpush3.bf16.msra.mxu1 %v3782_v31  ;;  %v3839_v31 = vpack.c.bf16 %v4252_v55, %v4251_v37  ;;  %v4291_v55 = vld [vmem:[#allocation2 + $0x330] sm:$0xff] }
 0x42a   :  { %3784 = vmatprep.subr.bf16.mxu1 %v4440_v40 }
 0x42d   :  { %3786 = vmatpush3.bf16.msra.mxu1 %v3785_v19  ;;  %v3842_v19 = vpack.c.bf16 %v4254_v50, %v4253_v3  ;;  %v4293_v50 = vld [vmem:[#allocation2 + $0x340] sm:$0xff] }
 0x42e   :  { %3787 = vmatprep.subr.bf16.mxu1 %v4440_v40 }
 0x431   :  { %3789 = vmatpush3.bf16.msra.mxu1 %v3788_v0  ;;  %v4256_v0 = vld [vmem:[#allocation2 + $0x218] sm:$0xff] }
 0x432   :  { %3790 = vmatprep.subr.bf16.mxu1 %v4440_v40  ;;  %v3845_v10 = vpack.c.bf16 %v4256_v0, %v4255_v2  ;;  %v4295_v2 = vld [vmem:[#allocation2 + $0x350] sm:$0xff]  ;;  %v4296_v0 = vld [vmem:[#allocation2 + $0x358] sm:$0xff] }
 0x435   :  { %3792 = vmatpush3.bf16.msra.mxu1 %v3791_v61  ;;  %v4258_v61 = vld [vmem:[#allocation2 + $0x228] sm:$0xff] }
 0x436   :  { %3793 = vmatprep.subr.bf16.mxu1 %v4440_v40  ;;  %v3848_v11 = vpack.c.bf16 %v4258_v61, %v4257_v4  ;;  %v4297_v4 = vld [vmem:[#allocation2 + $0x360] sm:$0xff]  ;;  %v4298_v61 = vld [vmem:[#allocation2 + $0x368] sm:$0xff] }
 0x438   :  { %3501 = vmatmul.mubr.f32.vlgmr.msra.gmra.mrb[2].mxu1 %v5199_v8  ;;  %v4261_v8 = vld [vmem:[#allocation2 + $0x240] sm:$0xff] }
 0x439   :  { %3795 = vmatpush3.bf16.msra.mxu1 %v3794_v47  ;;  %3535 = vmatprep.mubr.msk.f32.mxu1 %vm4441_vm3, %v4442_v24  ;;  %v3851_v47 = vpack.c.bf16 %v4260_v44, %v4259_v1  ;;  %v3854_v43 = vpack.c.bf16 %v4262_v57, %v4261_v8  ;;  %v4299_v1 = vld [vmem:[#allocation2 + $0x370] sm:$0xff]  ;;  %v4300_v44 = vld [vmem:[#allocation2 + $0x378] sm:$0xff]  ;;  %v4301_v8 = vld [vmem:[#allocation2 + $0x380] sm:$0xff] }
 0x43a   :  { %3796 = vmatprep.subr.bf16.mxu1 %v4440_v40  ;;  %v4302_v57 = vld [vmem:[#allocation2 + $0x388] sm:$0xff] }
 0x43d   :  { %3798 = vmatpush3.bf16.msra.mxu1 %v3797_v39  ;;  %v4263_v39 = vld [vmem:[#allocation2 + $0x250] sm:$0xff] }
 0x43e   :  { %3799 = vmatprep.subr.bf16.mxu1 %v4440_v40  ;;  %v3857_v15 = vpack.c.bf16 %v4264_v48, %v4263_v39  ;;  %v2295_v39 = vcombine.high %v5177_v59, %v5177_v59  ;;  %v4303_v48 = vld [vmem:[#allocation2 + $0x390] sm:$0xff] }
 0x441   :  { %3801 = vmatpush3.bf16.msra.mxu1 %v3800_v26  ;;  %v4265_v26 = vld [vmem:[#allocation2 + $0x260] sm:$0xff] }
 0x442   :  { %3802 = vmatprep.subr.bf16.mxu1 %v4440_v40  ;;  %v3860_v42 = vpack.c.bf16 %v4266_v46, %v4265_v26  ;;  %v4305_v46 = vld [vmem:[#allocation2 + $0x3a0] sm:$0xff] }
 0x445   :  { %3804 = vmatpush3.bf16.msra.mxu1 %v3803_v27  ;;  %v4267_v27 = vld [vmem:[#allocation2 + $0x270] sm:$0xff] }
 0x446   :  { %3805 = vmatprep.subr.bf16.mxu1 %v4440_v40  ;;  %v3863_v54 = vpack.c.bf16 %v4268_v51, %v4267_v27  ;;  %v4307_v51 = vld [vmem:[#allocation2 + $0x3b0] sm:$0xff] }
 0x449   :  { %3807 = vmatpush3.bf16.msra.mxu1 %v3806_v53  ;;  %v4269_v53 = vld [vmem:[#allocation2 + $0x280] sm:$0xff] }
 0x44a   :  { %3808 = vmatprep.subr.bf16.mxu1 %v4440_v40  ;;  %v3866_v49 = vpack.c.bf16 %v4270_v56, %v4269_v53  ;;  %v4309_v53 = vld [vmem:[#allocation2 + $0x3c0] sm:$0xff]  ;;  %v4310_v56 = vld [vmem:[#allocation2 + $0x3c8] sm:$0xff] }
 0x44d   :  { %3810 = vmatpush3.bf16.msra.mxu1 %v3809_v12  ;;  %v4271_v12 = vld [vmem:[#allocation2 + $0x290] sm:$0xff] }
 0x44e   :  { %3811 = vmatprep.subr.bf16.mxu1 %v4440_v40  ;;  %v3869_v14 = vpack.c.bf16 %v4272_v13, %v4271_v12  ;;  %v4312_v12 = vld [vmem:[#allocation2 + $0x3d8] sm:$0xff] }
 0x451   :  { %3813 = vmatpush3.bf16.msra.mxu1 %v3812_v16  ;;  %v4273_v16 = vld [vmem:[#allocation2 + $0x2a0] sm:$0xff] }
 0x452   :  { %3814 = vmatprep.subr.bf16.mxu1 %v4440_v40  ;;  %v3872_v18 = vpack.c.bf16 %v4274_v17, %v4273_v16  ;;  %v4313_v17 = vld [vmem:[#allocation2 + $0x3e0] sm:$0xff] }
 0x455   :  { %3816 = vmatpush3.bf16.msra.mxu1 %v3815_v23  ;;  %v4275_v23 = vld [vmem:[#allocation2 + $0x2b0] sm:$0xff] }
 0x456   :  { %3817 = vmatprep.subr.bf16.mxu1 %v4440_v40  ;;  %v3875_v28 = vpack.c.bf16 %v4276_v25, %v4275_v23  ;;  %v4315_v25 = vld [vmem:[#allocation2 + $0x3f0] sm:$0xff] }
 0x458   :  { %3536 = vmatmul.mubr.f32.vlgmr.msra.gmra.mrb[4].mxu1 %v2294_v30  ;;  %v4278_v30 = vld [vmem:[#allocation2 + $0x2c8] sm:$0xff] }
 0x459   :  { %3819 = vmatpush3.bf16.msra.mxu1 %v3818_v29  ;;  %3570 = vmatprep.mubr.msk.f32.mxu1 %vm4441_vm3, %v4442_v24  ;;  %v4277_v29 = vld [vmem:[#allocation2 + $0x2c0] sm:$0xff] }
 0x45a   :  { %3820 = vmatprep.subr.bf16.mxu1 %v4440_v40  ;;  %v3878_v33 = vpack.c.bf16 %v4278_v30, %v4277_v29  ;;  %v2297_v30 = vcombine.high %v5185_v52, %v5185_v52 }
 0x45d   :  { %3822 = vmatpush3.bf16.msra.mxu1 %v3821_v6  ;;  %v4280_v6 = vld [vmem:[#allocation2 + $0x2d8] sm:$0xff] }
 0x45e   :  { %3823 = vmatprep.subr.bf16.mxu1 %v4440_v40  ;;  %v3881_v60 = vpack.c.bf16 %v4280_v6, %v4279_v34 }
 0x461   :  { %3825 = vmatpush3.bf16.msra.mxu1 %v3824_v41  ;;  %v4282_v41 = vld [vmem:[#allocation2 + $0x2e8] sm:$0xff] }
 0x462   :  { %3826 = vmatprep.subr.bf16.mxu1 %v4440_v40  ;;  %v3884_v20 = vpack.c.bf16 %v4282_v41, %v4281_v38 }
 0x465   :  { %3828 = vmatpush3.bf16.msra.mxu1 %v3827_v32  ;;  %v4284_v32 = vld [vmem:[#allocation2 + $0x2f8] sm:$0xff] }
 0x466   :  { %3829 = vmatprep.subr.bf16.mxu1 %v4440_v40  ;;  %v3887_v7 = vpack.c.bf16 %v4284_v32, %v4283_v62 }
 0x469   :  { %3831 = vmatpush3.bf16.msra.mxu1 %v3830_v36  ;;  %v4286_v36 = vld [vmem:[#allocation2 + $0x308] sm:$0xff] }
 0x46a   :  { %3832 = vmatprep.subr.bf16.mxu1 %v4440_v40  ;;  %v3890_v58 = vpack.c.bf16 %v4286_v36, %v4285_v21 }
 0x46d   :  { %3834 = vmatpush3.bf16.msra.mxu1 %v3833_v22  ;;  %v4288_v22 = vld [vmem:[#allocation2 + $0x318] sm:$0xff] }
 0x46e   :  { %3835 = vmatprep.subr.bf16.mxu1 %v4440_v40  ;;  %v3893_v5 = vpack.c.bf16 %v4288_v22, %v4287_v63 }
 0x471   :  { %3837 = vmatpush3.bf16.msra.mxu1 %v3836_v35  ;;  %v4290_v35 = vld [vmem:[#allocation2 + $0x328] sm:$0xff] }
 0x472   :  { %3838 = vmatprep.subr.bf16.mxu1 %v4440_v40  ;;  %v3896_v37 = vpack.c.bf16 %v4290_v35, %v4289_v45 }
 0x475   :  { %3840 = vmatpush3.bf16.msra.mxu1 %v3839_v31  ;;  %v4292_v31 = vld [vmem:[#allocation2 + $0x338] sm:$0xff] }
 0x476   :  { %3841 = vmatprep.subr.bf16.mxu1 %v4440_v40  ;;  %v3899_v3 = vpack.c.bf16 %v4292_v31, %v4291_v55 }
 0x478   :  { %3571 = vmatmul.mubr.f32.vlgmr.msra.gmra.mrb[6].mxu1 %v2296_v9 }
 0x479   :  { %3843 = vmatpush3.bf16.msra.mxu1 %v3842_v19  ;;  %3605 = vmatprep.mubr.msk.f32.mxu1 %vm4441_vm3, %v4442_v24  ;;  %v4294_v19 = vld [vmem:[#allocation2 + $0x348] sm:$0xff] }
 0x47a   :  { %3844 = vmatprep.subr.bf16.mxu1 %v4440_v40  ;;  %v3902_v9 = vpack.c.bf16 %v4294_v19, %v4293_v50 }
 0x47d   :  { %3846 = vmatpush3.bf16.msra.mxu1 %v3845_v10  ;;  %v3905_v10 = vpack.c.bf16 %v4296_v0, %v4295_v2 }
 0x47e   :  { %3847 = vmatprep.subr.bf16.mxu1 %v4440_v40 }
 0x481   :  { %3849 = vmatpush3.bf16.msra.mxu1 %v3848_v11  ;;  %v3908_v11 = vpack.c.bf16 %v4298_v61, %v4297_v4 }
 0x482   :  { %3850 = vmatprep.subr.bf16.mxu1 %v4440_v40 }
 0x485   :  { %3852 = vmatpush3.bf16.msra.mxu1 %v3851_v47  ;;  %v3911_v47 = vpack.c.bf16 %v4300_v44, %v4299_v1 }
 0x486   :  { %3853 = vmatprep.subr.bf16.mxu1 %v4440_v40 }
 0x489   :  { %3855 = vmatpush3.bf16.msra.mxu1 %v3854_v43  ;;  %v3914_v43 = vpack.c.bf16 %v4302_v57, %v4301_v8 }
 0x48a   :  { %3856 = vmatprep.subr.bf16.mxu1 %v4440_v40 }
 0x48d   :  { %3858 = vmatpush3.bf16.msra.mxu1 %v3857_v15  ;;  %v4304_v15 = vld [vmem:[#allocation2 + $0x398] sm:$0xff] }
 0x48e   :  { %3859 = vmatprep.subr.bf16.mxu1 %v4440_v40  ;;  %v3917_v26 = vpack.c.bf16 %v4304_v15, %v4303_v48 }
 0x491   :  { %3861 = vmatpush3.bf16.msra.mxu1 %v3860_v42  ;;  %v4306_v42 = vld [vmem:[#allocation2 + $0x3a8] sm:$0xff] }
 0x492   :  { %3862 = vmatprep.subr.bf16.mxu1 %v4440_v40  ;;  %v3920_v27 = vpack.c.bf16 %v4306_v42, %v4305_v46 }
 0x495   :  { %3864 = vmatpush3.bf16.msra.mxu1 %v3863_v54 }
 0x496   :  { %3865 = vmatprep.subr.bf16.mxu1 %v4440_v40 }
 0x498   :  { %3606 = vmatmul.mubr.f32.vlgmr.msra.gmra.mrb[8].mxu1 %v5177_v59  ;;  %v4308_v59 = vld [vmem:[#allocation2 + $0x3b8] sm:$0xff] }
 0x499   :  { %3867 = vmatpush3.bf16.msra.mxu1 %v3866_v49  ;;  %3640 = vmatprep.mubr.msk.f32.mxu1 %vm4441_vm3, %v4442_v24  ;;  %v3923_v54 = vpack.c.bf16 %v4308_v59, %v4307_v51  ;;  %v3926_v49 = vpack.c.bf16 %v4310_v56, %v4309_v53 }
 0x49a   :  { %3868 = vmatprep.subr.bf16.mxu1 %v4440_v40 }
 0x49d   :  { %3870 = vmatpush3.bf16.msra.mxu1 %v3869_v14 }
 0x49e   :  { %3871 = vmatprep.subr.bf16.mxu1 %v4440_v40 }
 0x4a1   :  { %3873 = vmatpush3.bf16.msra.mxu1 %v3872_v18  ;;  %v4314_v18 = vld [vmem:[#allocation2 + $0x3e8] sm:$0xff] }
 0x4a2   :  { %3874 = vmatprep.subr.bf16.mxu1 %v4440_v40  ;;  %v3932_v23 = vpack.c.bf16 %v4314_v18, %v4313_v17 }
 0x4a5   :  { %3876 = vmatpush3.bf16.msra.mxu1 %v3875_v28  ;;  %v4316_v28 = vld [vmem:[#allocation2 + $0x3f8] sm:$0xff] }
 0x4a6   :  { %3877 = vmatprep.subr.bf16.mxu1 %v4440_v40  ;;  %v3935_v29 = vpack.c.bf16 %v4316_v28, %v4315_v25 }
 0x4a9   :  { %3879 = vmatpush3.bf16.msra.mxu1 %v3878_v33 }
 0x4aa   :  { %3880 = vmatprep.subr.bf16.mxu1 %v4440_v40 }
 0x4ad   :  { %3882 = vmatpush3.bf16.msra.mxu1 %v3881_v60 }
 0x4ae   :  { %3883 = vmatprep.subr.bf16.mxu1 %v4440_v40 }
 0x4b1   :  { %3885 = vmatpush3.bf16.msra.mxu1 %v3884_v20 }
 0x4b2   :  { %3886 = vmatprep.subr.bf16.mxu1 %v4440_v40 }
 0x4b5   :  { %3888 = vmatpush3.bf16.msra.mxu1 %v3887_v7 }
 0x4b6   :  { %3889 = vmatprep.subr.bf16.mxu1 %v4440_v40 }
 0x4b8   :  { %3641 = vmatmul.mubr.f32.vlgmr.msra.gmra.mrb[10].mxu1 %v5185_v52 }
 0x4b9   :  { %3891 = vmatpush3.bf16.msra.mxu1 %v3890_v58  ;;  %3675 = vmatprep.mubr.msk.f32.mxu1 %vm4441_vm3, %v4442_v24 }
 0x4ba   :  { %3892 = vmatprep.subr.bf16.mxu1 %v4440_v40 }
 0x4bd   :  { %3894 = vmatpush3.bf16.msra.mxu1 %v3893_v5 }
 0x4be   :  { %3895 = vmatprep.subr.bf16.mxu1 %v4440_v40 }
 0x4c1   :  { %3897 = vmatpush3.bf16.msra.mxu1 %v3896_v37 }
 0x4c2   :  { %3898 = vmatprep.subr.bf16.mxu1 %v4440_v40 }
 0x4c5   :  { %3900 = vmatpush3.bf16.msra.mxu1 %v3899_v3 }
 0x4c6   :  { %3901 = vmatprep.subr.bf16.mxu1 %v4440_v40 }
 0x4c9   :  { %3903 = vmatpush3.bf16.msra.mxu1 %v3902_v9 }
 0x4ca   :  { %3904 = vmatprep.subr.bf16.mxu1 %v4440_v40 }
 0x4cd   :  { %3906 = vmatpush3.bf16.msra.mxu1 %v3905_v10 }
 0x4ce   :  { %3907 = vmatprep.subr.bf16.mxu1 %v4440_v40 }
 0x4d1   :  { %3909 = vmatpush3.bf16.msra.mxu1 %v3908_v11 }
 0x4d2   :  { %3910 = vmatprep.subr.bf16.mxu1 %v4440_v40 }
 0x4d5   :  { %3912 = vmatpush3.bf16.msra.mxu1 %v3911_v47 }
 0x4d6   :  { %3913 = vmatprep.subr.bf16.mxu1 %v4440_v40 }
 0x4d8   :  { %3676 = vmatmul.mubr.f32.vlgmr.msra.gmra.mrb[12].mxu1 %v2295_v39 }
 0x4d9   :  { %3915 = vmatpush3.bf16.msra.mxu1 %v3914_v43  ;;  %3710 = vmatprep.mubr.msk.f32.mxu1 %vm4441_vm3, %v4442_v24  ;;  %v4311_v24 = vld [vmem:[#allocation2 + $0x3d0] sm:$0xff] }
 0x4da   :  { %3916 = vmatprep.subr.bf16.mxu1 %v4440_v40  ;;  %v3929_v13 = vpack.c.bf16 %v4312_v12, %v4311_v24 }
 0x4dd   :  { %3918 = vmatpush3.bf16.msra.mxu1 %v3917_v26 }
 0x4de   :  { %3919 = vmatprep.subr.bf16.mxu1 %v4440_v40 }
 0x4e1   :  { %3921 = vmatpush3.bf16.msra.mxu1 %v3920_v27 }
 0x4e2   :  { %3922 = vmatprep.subr.bf16.mxu1 %v4440_v40 }
 0x4e5   :  { %3924 = vmatpush3.bf16.msra.mxu1 %v3923_v54 }
 0x4e6   :  { %3925 = vmatprep.subr.bf16.mxu1 %v4440_v40 }
 0x4e9   :  { %3927 = vmatpush3.bf16.msra.mxu1 %v3926_v49 }
 0x4ea   :  { %3928 = vmatprep.subr.bf16.mxu1 %v4440_v40 }
 0x4eb   :  { %v2372_v14 = vpop.f32.mrb[0].mxu1 }
 0x4ec   :  { %v3467_v16 = vpop.f32.mrb[1].mxu1 }
 0x4ed   :  { %3930 = vmatpush3.bf16.msra.mxu1 %v3929_v13 }
 0x4ee   :  { %3931 = vmatprep.subr.bf16.mxu1 %v4440_v40 }
 0x4f1   :  { %3933 = vmatpush3.bf16.msra.mxu1 %v3932_v23 }
 0x4f2   :  { %3934 = vmatprep.subr.bf16.mxu1 %v4440_v40 }
 0x4f5   :  { %3936 = vmatpush3.bf16.msra.mxu1 %v3935_v29 }
 0x4f8   :  { %3711 = vmatmul.mubr.f32.vlgmr.msra.gmra.mrb[14].mxu1 %v2297_v30 }
 0x50b   :  { %v2442_v33 = vpop.f32.mrb[2].mxu1 }
 0x50c   :  { %v2882_v34 = vrot.slane %v2442_v33, 7  ;;  %v3502_v6 = vpop.f32.mrb[3].mxu1 }
 0x50e   :  { %v2883_v60 = vsel %vm5335_vm4, %v2882_v34, %v2372_v14 }
 0x52b   :  { %v2512_v38 = vpop.f32.mrb[4].mxu1 }
 0x52c   :  { %v2884_v41 = vrot.slane %v2512_v38, 6  ;;  %v3537_v20 = vpop.f32.mrb[5].mxu1 }
 0x52e   :  { %v2885_v62 = vsel %vm5336_vm5, %v2884_v41, %v2883_v60 }
 0x54b   :  { %v2582_v32 = vpop.f32.mrb[6].mxu1 }
 0x54c   :  { %v2886_v7 = vrot.slane %v2582_v32, 5  ;;  %v3572_v21 = vpop.f32.mrb[7].mxu1 }
 0x54e   :  { %v2887_v40 = vsel %vm5337_vm6, %v2886_v7, %v2885_v62 }
 0x54f   :  { %4394 = shalt.err (!%p4391_p0)
}
 0x550   :  { %s4395_s11 = scalar_lea.hbm %s5308_s5, 128 }
 0x551   :  { %p4396_p1 = scmp.ne.s32.totalorder %s5308_s5, %s4395_s11  ;;  %p4399_p2 = scmp.lt.u32.totalorder %s4395_s11, %s5308_s5 }
 0x553   :  { %p4401_p3 = pnand %p4399_p2, %p4396_p1 }
 0x555   :  { %4404 = shalt.err (!%p4401_p3)
}
 0x556   :  { %2917 = dma.vmem_to_hbm [thread:$0]  %s2915_s7, 128, %s5308_s5, [#allocation10]   ;;  %vm5338_vm7 = vcmask 1044484  }
 0x557   :  { %s4445_s17 = smov [#allocation8]  }
 0x558   :  { %s2904_s18 = sshll.u32 %s4445_s17, 4  ;;  %s2905_s18 = int_to_ptr.vmem [resolvable:$true] %s2904_s18 }
 0x559   :  { %s4405_s5 = scalar_lea.vmem %s2905_s18, 128  ;;  %p4410_p5 = scmp.lt.s32.totalorder %s2905_s18, %s2905_s18 }
 0x55a   :  { %p4406_p4 = scmp.ne.s32.totalorder %s2905_s18, %s4405_s5  ;;  %p4411_p6 = scmp.lt.s32.totalorder %s4405_s5, %s4405_s5 }
 0x55c   :  { %p4412_p7 = por %p4411_p6, %p4410_p5 }
 0x55e   :  { %p4413_p8 = pnand %p4412_p7, %p4406_p4 }
 0x56b   :  { %v2652_v52 = vpop.f32.mrb[8].mxu1 }
 0x56c   :  { %v2888_v36 = vrot.slane %v2652_v52, 4  ;;  %v3607_v58 = vpop.f32.mrb[9].mxu1 }
 0x56e   :  { %v2889_v63 = vsel %vm5338_vm7, %v2888_v36, %v2887_v40 }
 0x58b   :  { %v2722_v22 = vpop.f32.mrb[10].mxu1 }
 0x58c   :  { %v2890_v5 = vrot.slane %v2722_v22, 3  ;;  %v3642_v45 = vpop.f32.mrb[11].mxu1 }
 0x58e   :  { %v2891_v35 = vsel %vm2230_vm15, %v2890_v5, %v2889_v63 }
 0x5ab   :  { %v2792_v37 = vpop.f32.mrb[12].mxu1 }
 0x5ac   :  { %v2892_v55 = vrot.slane %v2792_v37, 2  ;;  %v3677_v31 = vpop.f32.mrb[13].mxu1 }
 0x5ae   :  { %v2893_v3 = vsel %vm2232_vm0, %v2892_v55, %v2891_v35 }
 0x5cb   :  { %v2862_v50 = vpop.f32.mrb[14].mxu1 }
 0x5cc   :  { %v2894_v19 = vrot.slane %v2862_v50, 1  ;;  %v3712_v9 = vpop.f32.mrb[15].mxu1 }
 0x5ce   :  { %v2895_v2 = vsel %vm2234_vm1, %v2894_v19, %v2893_v3 }
 0x5cf   :  { %2897 = vst [vmem:[#allocation8] sm:$0xff] %v2895_v2 }
 0x5d0   :  { %4416 = shalt.err (!%p4413_p8)
}
 0x5d1   :  { %s4417_s22 = scalar_lea.hbm %s5307_s4, 128 }
 0x5d2   :  { %p4418_p9 = scmp.ne.s32.totalorder %s5307_s4, %s4417_s22  ;;  %p4421_p10 = scmp.lt.u32.totalorder %s4417_s22, %s5307_s4 }
 0x5d4   :  { %p4423_p11 = pnand %p4421_p10, %p4418_p9 }
 0x5d6   :  { %4426 = shalt.err (!%p4423_p11)
}
 0x5d7   :  { %2907 = dma.vmem_to_hbm [thread:$0]  %s2905_s18, 128, %s5307_s4, [#allocation4]  }
 0x5d8   :  { %4431 = dma.done.wait [#allocation4], 128  }
 0x5d9   :  { %4432 = vsyncadd [#allocation4], 4294967168 }
 0x5da   :  { %4433 = dma.done.wait [#allocation10], 128  }
 0x5db   :  { %4434 = vsyncadd [#allocation10], 4294967168 }
 0x5dc   :  { %2924 = vsyncpa [#allocation3], 1 }
 0x5dd   :  { %2925 = vsyncpa [#allocation6], 1 }
 0x5de   :  { %2926 = vsyncpa [#allocation4], 1 }
 0x5df   :  { %2927 = vsyncpa [#allocation10], 1 }

</bundles_post_ra>
